<compile_context>
chip_gen: v7x
topology: tpu7x:2x2x1
jax: 0.10.0
libtpu: 0.0.40
codegen_flags: <defaults>
</compile_context>

<pallas_src>
import functools

import jax
import jax.numpy as jnp
from jax.experimental import pallas as pl
from jax.experimental.pallas import tpu as pltpu


# ----------------------- fused 2-layer LSTM + FC kernel -----------------------
def _fused_lstm_fc_kernel(x_ref, wih1_ref, whh1_ref, b1_ref, wih2_ref, whh2_ref,
                          b2_ref, fcw_ref, fcb_ref, out_ref, *, T, Bp, H):
    """Single-invocation kernel.

    x_ref:    (T*Bp, D)   time-major, batch-padded input, flattened over (T, Bp)
    wih1_ref: (D, 4H)     layer-1 input->gates weights
    whh1_ref: (H, 4H)     layer-1 hidden->gates weights
    b1_ref:   (1, 4H)     layer-1 bias (b_ih + b_hh)
    wih2_ref: (H, 4H)     layer-2 input(h1)->gates weights
    whh2_ref: (H, 4H)     layer-2 hidden->gates weights
    b2_ref:   (1, 4H)     layer-2 bias (b_ih + b_hh)
    fcw_ref:  (H, C)      FC weights
    fcb_ref:  (1, C)      FC bias
    out_ref:  (Bp, C)     logits (last time step only, FC fused)
    """
    # Hoisted layer-1 input projection: one big MXU-friendly matmul, bias folded in.
    # Kept as a register-resident value (8 f32 vregs at T=8, Bp=8, 4H=128); indexed with
    # static t below — no VMEM scratch round-trip.
    proj = (
        jnp.dot(x_ref[...], wih1_ref[...], preferred_element_type=jnp.float32)
        + b1_ref[...]
    )  # (T*Bp, 4H)

    # Loop-invariant weight loads / broadcasts, hoisted out of the recurrence.
    whh1 = whh1_ref[...]                                   # (H, 4H)
    wih2 = wih2_ref[...]                                   # (H, 4H)
    whh2 = whh2_ref[...]                                   # (H, 4H)
    b2b = jnp.broadcast_to(b2_ref[...], (Bp, 4 * H))       # hoisted (no per-iter bcast)

    # Lane mask selecting the g (cell candidate) block; hoisted.
    lane = jax.lax.broadcasted_iota(jnp.int32, (Bp, 4 * H), 1)
    g_mask = (lane >= 2 * H) & (lane < 3 * H)

    def cell(gates, c_prev):
        # Single EUP pass over the full (Bp, 4H) vreg: tanh(x) = 2*sigmoid(2x) - 1.
        pre = jnp.where(g_mask, 2.0 * gates, gates)        # masked VPU pre-scale
        s = jax.nn.sigmoid(pre)                            # one full-vreg EUP pass
        act = jnp.where(g_mask, 2.0 * s - 1.0, s)          # masked VPU post-fix
        i_g = act[:, 0 * H:1 * H]
        f_g = act[:, 1 * H:2 * H]
        g_g = act[:, 2 * H:3 * H]
        o_g = act[:, 3 * H:4 * H]
        c_new = f_g * c_prev + i_g * g_g
        h_new = o_g * jnp.tanh(c_new)
        return h_new, c_new

    def gx1(t):  # static t -> static sublane slice of the hoisted projection
        return proj[t * Bp:(t + 1) * Bp, :]

    zeros = jnp.zeros((Bp, H), jnp.float32)

    # ---- Skewed (software-pipelined) recurrence ----
    # Prologue: layer-1 step 0 (h1_prev = 0, so the recurrent term vanishes).
    h1, c1 = cell(gx1(0), zeros)
    h2, c2 = zeros, zeros

    # Steady state: iteration t computes layer-2(t) and layer-1(t+1). Both depend only
    # on h1(t) (and their own carries), so their matmuls / EUP passes are independent
    # and can be overlapped by the scheduler.
    # Fully unrolled (static Python loop) at T=8.
    # TODO(synk): switch to lax.fori_loop with partial unroll if T grows large.
    for t in range(T - 1):
        g2 = (jnp.dot(h1, wih2, preferred_element_type=jnp.float32)
              + jnp.dot(h2, whh2, preferred_element_type=jnp.float32) + b2b)
        g1 = gx1(t + 1) + jnp.dot(h1, whh1, preferred_element_type=jnp.float32)
        h2, c2 = cell(g2, c2)      # layer-2, step t
        h1, c1 = cell(g1, c1)      # layer-1, step t+1

    # Epilogue: layer-2 at the final step.
    g2 = (jnp.dot(h1, wih2, preferred_element_type=jnp.float32)
          + jnp.dot(h2, whh2, preferred_element_type=jnp.float32) + b2b)
    h2, c2 = cell(g2, c2)

    # Fused FC head on the last hidden state only.
    out_ref[...] = (
        jnp.dot(h2, fcw_ref[...], preferred_element_type=jnp.float32) + fcb_ref[...]
    )


def _fused_forward(x2d, w_ih1, w_hh1, b1, w_ih2, w_hh2, b2, fc_w, fc_b,
                   *, T, Bp, H, C):
    D = x2d.shape[1]
    kernel = functools.partial(_fused_lstm_fc_kernel, T=T, Bp=Bp, H=H)
    # NOTE(v7x): once Bp >= 16, add a batch grid axis with
    # dimension_semantics=("parallel",) to split the independent batch recurrences
    # across the two TensorCores; no-op at Bp=8.
    return pl.pallas_call(
        kernel,
        out_shape=jax.ShapeDtypeStruct((Bp, C), jnp.float32),
        in_specs=[
            pl.BlockSpec((T * Bp, D), lambda: (0, 0)),
            pl.BlockSpec((D, 4 * H), lambda: (0, 0)),
            pl.BlockSpec((H, 4 * H), lambda: (0, 0)),
            pl.BlockSpec((1, 4 * H), lambda: (0, 0)),
            pl.BlockSpec((H, 4 * H), lambda: (0, 0)),
            pl.BlockSpec((H, 4 * H), lambda: (0, 0)),
            pl.BlockSpec((1, 4 * H), lambda: (0, 0)),
            pl.BlockSpec((H, C), lambda: (0, 0)),
            pl.BlockSpec((1, C), lambda: (0, 0)),
        ],
        out_specs=pl.BlockSpec((Bp, C), lambda: (0, 0)),
    )(x2d, w_ih1, w_hh1, b1.reshape(1, 4 * H), w_ih2, w_hh2, b2.reshape(1, 4 * H),
      fc_w, fc_b.reshape(1, C))


# --------------------------------- Module glue ---------------------------------
class MultiLayerLSTMPallas:
    """JAX/Pallas equivalent of MultiLayerLSTM(layer_type=nn.LSTM, bidirectional=False)."""

    def __init__(self, input_size, num_hidden=32, num_layers=2, num_classes=10,
                 key=jax.random.PRNGKey(0)):
        assert num_layers == 2, "fused kernel implements the num_layers=2 configuration"
        self.input_size = input_size
        self.num_hidden = num_hidden
        self.num_layers = num_layers
        self.num_classes = num_classes

        k = 1.0 / jnp.sqrt(jnp.float32(num_hidden))
        params = []
        for layer in range(num_layers):
            d_in = input_size if layer == 0 else num_hidden
            key, k1, k2, k3, k4 = jax.random.split(key, 5)
            # PyTorch stores (4H, D)/(4H, H); keep matmul-friendly transposed copies.
            w_ih = jax.random.uniform(k1, (4 * num_hidden, d_in), jnp.float32, -k, k).T
            w_hh = jax.random.uniform(k2, (4 * num_hidden, num_hidden), jnp.float32, -k, k).T
            b_ih = jax.random.uniform(k3, (4 * num_hidden,), jnp.float32, -k, k)
            b_hh = jax.random.uniform(k4, (4 * num_hidden,), jnp.float32, -k, k)
            params.append((jnp.asarray(w_ih), jnp.asarray(w_hh), b_ih + b_hh))
        self.lstm_params = params

        key, kf1, kf2 = jax.random.split(key, 3)
        kfc = 1.0 / jnp.sqrt(jnp.float32(num_hidden))
        self.fc_w = jax.random.uniform(
            kf1, (num_classes, num_hidden), jnp.float32, -kfc, kfc).T  # (H, C)
        self.fc_b = jax.random.uniform(kf2, (num_classes,), jnp.float32, -kfc, kfc)

    @functools.partial(jax.jit, static_argnums=0)
    def __call__(self, x):
        # x: (B, T, D) batch-first, like the PyTorch module.
        # NOTE(v6e/v7x): at real sizes cast operands to bf16 (f32 accumulation) and pad
        # batch to 16; at these toy f32 sizes it is not worth it (and not on v5e at all).
        B, T, D = x.shape
        H, C = self.num_hidden, self.num_classes
        Bp = ((B + 7) // 8) * 8  # pad batch to one f32 sublane tile

        x_tm = jnp.transpose(x, (1, 0, 2)).astype(jnp.float32)      # (T, B, D)
        x_tm = jnp.pad(x_tm, ((0, 0), (0, Bp - B), (0, 0)))          # (T, Bp, D)
        x2d = x_tm.reshape(T * Bp, D)

        w_ih1, w_hh1, b1 = self.lstm_params[0]
        w_ih2, w_hh2, b2 = self.lstm_params[1]

        out = _fused_forward(x2d, w_ih1, w_hh1, b1, w_ih2, w_hh2, b2,
                             self.fc_w, self.fc_b, T=T, Bp=Bp, H=H, C=C)
        return out[:B].reshape(B, -1)


# Pure-JAX reference (for sanity checking the kernel).
def _reference_forward(model, x):
    x_tm = jnp.transpose(x, (1, 0, 2)).astype(jnp.float32)
    h_seq = x_tm
    H = model.num_hidden
    for (w_ih, w_hh, b) in model.lstm_params:
        B = h_seq.shape[1]

        def step(carry, x_t):
            h, c = carry
            gates = x_t @ w_ih + h @ w_hh + b
            i_g = jax.nn.sigmoid(gates[:, 0 * H:1 * H])
            f_g = jax.nn.sigmoid(gates[:, 1 * H:2 * H])
            g_g = jnp.tanh(gates[:, 2 * H:3 * H])
            o_g = jax.nn.sigmoid(gates[:, 3 * H:4 * H])
            c = f_g * c + i_g * g_g
            h = o_g * jnp.tanh(c)
            return (h, c), h

        init = (jnp.zeros((B, H), jnp.float32), jnp.zeros((B, H), jnp.float32))
        _, h_seq = jax.lax.scan(step, init, h_seq)
    last = h_seq[-1]
    return last @ model.fc_w + model.fc_b


if __name__ == "__main__":
    batch, seq, input_size = 2, 8, 16
    num_hidden, num_layers, num_classes = 32, 2, 10

    root = jax.random.PRNGKey(0)
    k_model, k_data = jax.random.split(root)

    model = MultiLayerLSTMPallas(
        input_size=input_size,
        num_hidden=num_hidden,
        num_layers=num_layers,
        num_classes=num_classes,
        key=k_model,
    )

    x = jax.random.normal(k_data, (batch, seq, input_size), jnp.float32)

    out = jax.block_until_ready(model(x))
    assert out.shape == (batch, num_classes), out.shape

    ref = jax.block_until_ready(_reference_forward(model, x))
    assert jnp.allclose(out, ref, rtol=1e-3, atol=1e-3), \
        f"max abs err {jnp.max(jnp.abs(out - ref))}"

    print("KERNEL_OK")
</pallas_src>

<mosaic_0001>
module attributes {stable_mosaic.version = 11 : i64} {
  func.func @_fused_lstm_fc_kernel(%arg0: memref<64x16xf32, #tpu.memory_space<vmem>>, %arg1: memref<16x128xf32, #tpu.memory_space<vmem>>, %arg2: memref<32x128xf32, #tpu.memory_space<vmem>>, %arg3: memref<1x128xf32, #tpu.memory_space<vmem>>, %arg4: memref<32x128xf32, #tpu.memory_space<vmem>>, %arg5: memref<32x128xf32, #tpu.memory_space<vmem>>, %arg6: memref<1x128xf32, #tpu.memory_space<vmem>>, %arg7: memref<32x10xf32, #tpu.memory_space<vmem>>, %arg8: memref<1x10xf32, #tpu.memory_space<vmem>>, %arg9: memref<8x10xf32, #tpu.memory_space<vmem>>) attributes {dimension_semantics = [], scalar_prefetch = 0 : i64, scratch_operands = 0 : i64, tpu.core_type = #tpu.core_type<tc>} {
    %c0 = arith.constant 0 : index
    %c0_0 = arith.constant 0 : index
    %0 = vector.load %arg0[%c0, %c0_0] : memref<64x16xf32, #tpu.memory_space<vmem>>, vector<64x16xf32>
    %c0_1 = arith.constant 0 : index
    %c0_2 = arith.constant 0 : index
    %1 = vector.load %arg1[%c0_1, %c0_2] : memref<16x128xf32, #tpu.memory_space<vmem>>, vector<16x128xf32>
    %cst = arith.constant dense<0.000000e+00> : vector<64x128xf32>
    %2 = tpu.matmul %0, %1, %cst {dimension_numbers = #tpu.dot_dimension_numbers<[1], [0], [0], [1], [0, 0, 1, 1], [], []>} : vector<64x16xf32>, vector<16x128xf32>, vector<64x128xf32> -> vector<64x128xf32>
    %c0_3 = arith.constant 0 : index
    %c0_4 = arith.constant 0 : index
    %3 = vector.load %arg3[%c0_3, %c0_4] : memref<1x128xf32, #tpu.memory_space<vmem>>, vector<1x128xf32>
    %4 = vector.broadcast %3 : vector<1x128xf32> to vector<64x128xf32>
    %5 = arith.addf %2, %4 : vector<64x128xf32>
    %c0_5 = arith.constant 0 : index
    %c0_6 = arith.constant 0 : index
    %6 = vector.load %arg2[%c0_5, %c0_6] : memref<32x128xf32, #tpu.memory_space<vmem>>, vector<32x128xf32>
    %c0_7 = arith.constant 0 : index
    %c0_8 = arith.constant 0 : index
    %7 = vector.load %arg4[%c0_7, %c0_8] : memref<32x128xf32, #tpu.memory_space<vmem>>, vector<32x128xf32>
    %c0_9 = arith.constant 0 : index
    %c0_10 = arith.constant 0 : index
    %8 = vector.load %arg5[%c0_9, %c0_10] : memref<32x128xf32, #tpu.memory_space<vmem>>, vector<32x128xf32>
    %c0_11 = arith.constant 0 : index
    %c0_12 = arith.constant 0 : index
    %9 = vector.load %arg6[%c0_11, %c0_12] : memref<1x128xf32, #tpu.memory_space<vmem>>, vector<1x128xf32>
    %10 = vector.shape_cast %9 : vector<1x128xf32> to vector<1x128xf32>
    %11 = vector.broadcast %10 : vector<1x128xf32> to vector<8x128xf32>
    %12 = tpu.iota {dimensions = array<i32: 1>} : vector<8x128xi32>
    %c64_i32 = arith.constant 64 : i32
    %13 = vector.broadcast %c64_i32 : i32 to vector<8x128xi32>
    %14 = arith.cmpi sge, %12, %13 : vector<8x128xi32>
    %c96_i32 = arith.constant 96 : i32
    %15 = vector.broadcast %c96_i32 : i32 to vector<8x128xi32>
    %16 = arith.cmpi slt, %12, %15 : vector<8x128xi32>
    %17 = arith.andi %14, %16 : vector<8x128xi1>
    %cst_13 = arith.constant 0.000000e+00 : f32
    %18 = vector.broadcast %cst_13 : f32 to vector<8x32xf32>
    %19 = vector.extract_strided_slice %5 {offsets = [0, 0], sizes = [8, 128], strides = [1, 1]} : vector<64x128xf32> to vector<8x128xf32>
    %cst_14 = arith.constant 2.000000e+00 : f32
    %20 = vector.broadcast %cst_14 : f32 to vector<8x128xf32>
    %21 = arith.mulf %20, %19 : vector<8x128xf32>
    %22 = arith.select %17, %21, %19 : vector<8x128xi1>, vector<8x128xf32>
    %23 = arith.negf %22 : vector<8x128xf32>
    %24 = math.exp %23 : vector<8x128xf32>
    %cst_15 = arith.constant 1.000000e+00 : f32
    %25 = vector.broadcast %cst_15 : f32 to vector<8x128xf32>
    %26 = arith.addf %25, %24 : vector<8x128xf32>
    %27 = arith.divf %25, %26 : vector<8x128xf32>
    %cst_16 = arith.constant 2.000000e+00 : f32
    %28 = vector.broadcast %cst_16 : f32 to vector<8x128xf32>
    %29 = arith.mulf %28, %27 : vector<8x128xf32>
    %cst_17 = arith.constant 1.000000e+00 : f32
    %30 = vector.broadcast %cst_17 : f32 to vector<8x128xf32>
    %31 = arith.subf %29, %30 : vector<8x128xf32>
    %32 = arith.select %17, %31, %27 : vector<8x128xi1>, vector<8x128xf32>
    %33 = vector.extract_strided_slice %32 {offsets = [0, 0], sizes = [8, 32], strides = [1, 1]} : vector<8x128xf32> to vector<8x32xf32>
    %34 = vector.extract_strided_slice %32 {offsets = [0, 32], sizes = [8, 32], strides = [1, 1]} : vector<8x128xf32> to vector<8x32xf32>
    %35 = vector.extract_strided_slice %32 {offsets = [0, 64], sizes = [8, 32], strides = [1, 1]} : vector<8x128xf32> to vector<8x32xf32>
    %36 = vector.extract_strided_slice %32 {offsets = [0, 96], sizes = [8, 32], strides = [1, 1]} : vector<8x128xf32> to vector<8x32xf32>
    %37 = arith.mulf %34, %18 : vector<8x32xf32>
    %38 = arith.mulf %33, %35 : vector<8x32xf32>
    %39 = arith.addf %37, %38 : vector<8x32xf32>
    %40 = math.tanh %39 : vector<8x32xf32>
    %41 = arith.mulf %36, %40 : vector<8x32xf32>
    %cst_18 = arith.constant dense<0.000000e+00> : vector<8x128xf32>
    %42 = tpu.matmul %41, %7, %cst_18 {dimension_numbers = #tpu.dot_dimension_numbers<[1], [0], [0], [1], [0, 0, 1, 1], [], []>} : vector<8x32xf32>, vector<32x128xf32>, vector<8x128xf32> -> vector<8x128xf32>
    %cst_19 = arith.constant dense<0.000000e+00> : vector<8x128xf32>
    %43 = tpu.matmul %18, %8, %cst_19 {dimension_numbers = #tpu.dot_dimension_numbers<[1], [0], [0], [1], [0, 0, 1, 1], [], []>} : vector<8x32xf32>, vector<32x128xf32>, vector<8x128xf32> -> vector<8x128xf32>
    %44 = arith.addf %42, %43 : vector<8x128xf32>
    %45 = arith.addf %44, %11 : vector<8x128xf32>
    %46 = vector.extract_strided_slice %5 {offsets = [8, 0], sizes = [8, 128], strides = [1, 1]} : vector<64x128xf32> to vector<8x128xf32>
    %cst_20 = arith.constant dense<0.000000e+00> : vector<8x128xf32>
    %47 = tpu.matmul %41, %6, %cst_20 {dimension_numbers = #tpu.dot_dimension_numbers<[1], [0], [0], [1], [0, 0, 1, 1], [], []>} : vector<8x32xf32>, vector<32x128xf32>, vector<8x128xf32> -> vector<8x128xf32>
    %48 = arith.addf %46, %47 : vector<8x128xf32>
    %cst_21 = arith.constant 2.000000e+00 : f32
    %49 = vector.broadcast %cst_21 : f32 to vector<8x128xf32>
    %50 = arith.mulf %49, %45 : vector<8x128xf32>
    %51 = arith.select %17, %50, %45 : vector<8x128xi1>, vector<8x128xf32>
    %52 = arith.negf %51 : vector<8x128xf32>
    %53 = math.exp %52 : vector<8x128xf32>
    %cst_22 = arith.constant 1.000000e+00 : f32
    %54 = vector.broadcast %cst_22 : f32 to vector<8x128xf32>
    %55 = arith.addf %54, %53 : vector<8x128xf32>
    %56 = arith.divf %54, %55 : vector<8x128xf32>
    %cst_23 = arith.constant 2.000000e+00 : f32
    %57 = vector.broadcast %cst_23 : f32 to vector<8x128xf32>
    %58 = arith.mulf %57, %56 : vector<8x128xf32>
    %cst_24 = arith.constant 1.000000e+00 : f32
    %59 = vector.broadcast %cst_24 : f32 to vector<8x128xf32>
    %60 = arith.subf %58, %59 : vector<8x128xf32>
    %61 = arith.select %17, %60, %56 : vector<8x128xi1>, vector<8x128xf32>
    %62 = vector.extract_strided_slice %61 {offsets = [0, 0], sizes = [8, 32], strides = [1, 1]} : vector<8x128xf32> to vector<8x32xf32>
    %63 = vector.extract_strided_slice %61 {offsets = [0, 32], sizes = [8, 32], strides = [1, 1]} : vector<8x128xf32> to vector<8x32xf32>
    %64 = vector.extract_strided_slice %61 {offsets = [0, 64], sizes = [8, 32], strides = [1, 1]} : vector<8x128xf32> to vector<8x32xf32>
    %65 = vector.extract_strided_slice %61 {offsets = [0, 96], sizes = [8, 32], strides = [1, 1]} : vector<8x128xf32> to vector<8x32xf32>
    %66 = arith.mulf %63, %18 : vector<8x32xf32>
    %67 = arith.mulf %62, %64 : vector<8x32xf32>
    %68 = arith.addf %66, %67 : vector<8x32xf32>
    %69 = math.tanh %68 : vector<8x32xf32>
    %70 = arith.mulf %65, %69 : vector<8x32xf32>
    %cst_25 = arith.constant 2.000000e+00 : f32
    %71 = vector.broadcast %cst_25 : f32 to vector<8x128xf32>
    %72 = arith.mulf %71, %48 : vector<8x128xf32>
    %73 = arith.select %17, %72, %48 : vector<8x128xi1>, vector<8x128xf32>
    %74 = arith.negf %73 : vector<8x128xf32>
    %75 = math.exp %74 : vector<8x128xf32>
    %cst_26 = arith.constant 1.000000e+00 : f32
    %76 = vector.broadcast %cst_26 : f32 to vector<8x128xf32>
    %77 = arith.addf %76, %75 : vector<8x128xf32>
    %78 = arith.divf %76, %77 : vector<8x128xf32>
    %cst_27 = arith.constant 2.000000e+00 : f32
    %79 = vector.broadcast %cst_27 : f32 to vector<8x128xf32>
    %80 = arith.mulf %79, %78 : vector<8x128xf32>
    %cst_28 = arith.constant 1.000000e+00 : f32
    %81 = vector.broadcast %cst_28 : f32 to vector<8x128xf32>
    %82 = arith.subf %80, %81 : vector<8x128xf32>
    %83 = arith.select %17, %82, %78 : vector<8x128xi1>, vector<8x128xf32>
    %84 = vector.extract_strided_slice %83 {offsets = [0, 0], sizes = [8, 32], strides = [1, 1]} : vector<8x128xf32> to vector<8x32xf32>
    %85 = vector.extract_strided_slice %83 {offsets = [0, 32], sizes = [8, 32], strides = [1, 1]} : vector<8x128xf32> to vector<8x32xf32>
    %86 = vector.extract_strided_slice %83 {offsets = [0, 64], sizes = [8, 32], strides = [1, 1]} : vector<8x128xf32> to vector<8x32xf32>
    %87 = vector.extract_strided_slice %83 {offsets = [0, 96], sizes = [8, 32], strides = [1, 1]} : vector<8x128xf32> to vector<8x32xf32>
    %88 = arith.mulf %85, %39 : vector<8x32xf32>
    %89 = arith.mulf %84, %86 : vector<8x32xf32>
    %90 = arith.addf %88, %89 : vector<8x32xf32>
    %91 = math.tanh %90 : vector<8x32xf32>
    %92 = arith.mulf %87, %91 : vector<8x32xf32>
    %cst_29 = arith.constant dense<0.000000e+00> : vector<8x128xf32>
    %93 = tpu.matmul %92, %7, %cst_29 {dimension_numbers = #tpu.dot_dimension_numbers<[1], [0], [0], [1], [0, 0, 1, 1], [], []>} : vector<8x32xf32>, vector<32x128xf32>, vector<8x128xf32> -> vector<8x128xf32>
    %cst_30 = arith.constant dense<0.000000e+00> : vector<8x128xf32>
    %94 = tpu.matmul %70, %8, %cst_30 {dimension_numbers = #tpu.dot_dimension_numbers<[1], [0], [0], [1], [0, 0, 1, 1], [], []>} : vector<8x32xf32>, vector<32x128xf32>, vector<8x128xf32> -> vector<8x128xf32>
    %95 = arith.addf %93, %94 : vector<8x128xf32>
    %96 = arith.addf %95, %11 : vector<8x128xf32>
    %97 = vector.extract_strided_slice %5 {offsets = [16, 0], sizes = [8, 128], strides = [1, 1]} : vector<64x128xf32> to vector<8x128xf32>
    %cst_31 = arith.constant dense<0.000000e+00> : vector<8x128xf32>
    %98 = tpu.matmul %92, %6, %cst_31 {dimension_numbers = #tpu.dot_dimension_numbers<[1], [0], [0], [1], [0, 0, 1, 1], [], []>} : vector<8x32xf32>, vector<32x128xf32>, vector<8x128xf32> -> vector<8x128xf32>
    %99 = arith.addf %97, %98 : vector<8x128xf32>
    %cst_32 = arith.constant 2.000000e+00 : f32
    %100 = vector.broadcast %cst_32 : f32 to vector<8x128xf32>
    %101 = arith.mulf %100, %96 : vector<8x128xf32>
    %102 = arith.select %17, %101, %96 : vector<8x128xi1>, vector<8x128xf32>
    %103 = arith.negf %102 : vector<8x128xf32>
    %104 = math.exp %103 : vector<8x128xf32>
    %cst_33 = arith.constant 1.000000e+00 : f32
    %105 = vector.broadcast %cst_33 : f32 to vector<8x128xf32>
    %106 = arith.addf %105, %104 : vector<8x128xf32>
    %107 = arith.divf %105, %106 : vector<8x128xf32>
    %cst_34 = arith.constant 2.000000e+00 : f32
    %108 = vector.broadcast %cst_34 : f32 to vector<8x128xf32>
    %109 = arith.mulf %108, %107 : vector<8x128xf32>
    %cst_35 = arith.constant 1.000000e+00 : f32
    %110 = vector.broadcast %cst_35 : f32 to vector<8x128xf32>
    %111 = arith.subf %109, %110 : vector<8x128xf32>
    %112 = arith.select %17, %111, %107 : vector<8x128xi1>, vector<8x128xf32>
    %113 = vector.extract_strided_slice %112 {offsets = [0, 0], sizes = [8, 32], strides = [1, 1]} : vector<8x128xf32> to vector<8x32xf32>
    %114 = vector.extract_strided_slice %112 {offsets = [0, 32], sizes = [8, 32], strides = [1, 1]} : vector<8x128xf32> to vector<8x32xf32>
    %115 = vector.extract_strided_slice %112 {offsets = [0, 64], sizes = [8, 32], strides = [1, 1]} : vector<8x128xf32> to vector<8x32xf32>
    %116 = vector.extract_strided_slice %112 {offsets = [0, 96], sizes = [8, 32], strides = [1, 1]} : vector<8x128xf32> to vector<8x32xf32>
    %117 = arith.mulf %114, %68 : vector<8x32xf32>
    %118 = arith.mulf %113, %115 : vector<8x32xf32>
    %119 = arith.addf %117, %118 : vector<8x32xf32>
    %120 = math.tanh %119 : vector<8x32xf32>
    %121 = arith.mulf %116, %120 : vector<8x32xf32>
    %cst_36 = arith.constant 2.000000e+00 : f32
    %122 = vector.broadcast %cst_36 : f32 to vector<8x128xf32>
    %123 = arith.mulf %122, %99 : vector<8x128xf32>
    %124 = arith.select %17, %123, %99 : vector<8x128xi1>, vector<8x128xf32>
    %125 = arith.negf %124 : vector<8x128xf32>
    %126 = math.exp %125 : vector<8x128xf32>
    %cst_37 = arith.constant 1.000000e+00 : f32
    %127 = vector.broadcast %cst_37 : f32 to vector<8x128xf32>
    %128 = arith.addf %127, %126 : vector<8x128xf32>
    %129 = arith.divf %127, %128 : vector<8x128xf32>
    %cst_38 = arith.constant 2.000000e+00 : f32
    %130 = vector.broadcast %cst_38 : f32 to vector<8x128xf32>
    %131 = arith.mulf %130, %129 : vector<8x128xf32>
    %cst_39 = arith.constant 1.000000e+00 : f32
    %132 = vector.broadcast %cst_39 : f32 to vector<8x128xf32>
    %133 = arith.subf %131, %132 : vector<8x128xf32>
    %134 = arith.select %17, %133, %129 : vector<8x128xi1>, vector<8x128xf32>
    %135 = vector.extract_strided_slice %134 {offsets = [0, 0], sizes = [8, 32], strides = [1, 1]} : vector<8x128xf32> to vector<8x32xf32>
    %136 = vector.extract_strided_slice %134 {offsets = [0, 32], sizes = [8, 32], strides = [1, 1]} : vector<8x128xf32> to vector<8x32xf32>
    %137 = vector.extract_strided_slice %134 {offsets = [0, 64], sizes = [8, 32], strides = [1, 1]} : vector<8x128xf32> to vector<8x32xf32>
    %138 = vector.extract_strided_slice %134 {offsets = [0, 96], sizes = [8, 32], strides = [1, 1]} : vector<8x128xf32> to vector<8x32xf32>
    %139 = arith.mulf %136, %90 : vector<8x32xf32>
    %140 = arith.mulf %135, %137 : vector<8x32xf32>
    %141 = arith.addf %139, %140 : vector<8x32xf32>
    %142 = math.tanh %141 : vector<8x32xf32>
    %143 = arith.mulf %138, %142 : vector<8x32xf32>
    %cst_40 = arith.constant dense<0.000000e+00> : vector<8x128xf32>
    %144 = tpu.matmul %143, %7, %cst_40 {dimension_numbers = #tpu.dot_dimension_numbers<[1], [0], [0], [1], [0, 0, 1, 1], [], []>} : vector<8x32xf32>, vector<32x128xf32>, vector<8x128xf32> -> vector<8x128xf32>
    %cst_41 = arith.constant dense<0.000000e+00> : vector<8x128xf32>
    %145 = tpu.matmul %121, %8, %cst_41 {dimension_numbers = #tpu.dot_dimension_numbers<[1], [0], [0], [1], [0, 0, 1, 1], [], []>} : vector<8x32xf32>, vector<32x128xf32>, vector<8x128xf32> -> vector<8x128xf32>
    %146 = arith.addf %144, %145 : vector<8x128xf32>
    %147 = arith.addf %146, %11 : vector<8x128xf32>
    %148 = vector.extract_strided_slice %5 {offsets = [24, 0], sizes = [8, 128], strides = [1, 1]} : vector<64x128xf32> to vector<8x128xf32>
    %cst_42 = arith.constant dense<0.000000e+00> : vector<8x128xf32>
    %149 = tpu.matmul %143, %6, %cst_42 {dimension_numbers = #tpu.dot_dimension_numbers<[1], [0], [0], [1], [0, 0, 1, 1], [], []>} : vector<8x32xf32>, vector<32x128xf32>, vector<8x128xf32> -> vector<8x128xf32>
    %150 = arith.addf %148, %149 : vector<8x128xf32>
    %cst_43 = arith.constant 2.000000e+00 : f32
    %151 = vector.broadcast %cst_43 : f32 to vector<8x128xf32>
    %152 = arith.mulf %151, %147 : vector<8x128xf32>
    %153 = arith.select %17, %152, %147 : vector<8x128xi1>, vector<8x128xf32>
    %154 = arith.negf %153 : vector<8x128xf32>
    %155 = math.exp %154 : vector<8x128xf32>
    %cst_44 = arith.constant 1.000000e+00 : f32
    %156 = vector.broadcast %cst_44 : f32 to vector<8x128xf32>
    %157 = arith.addf %156, %155 : vector<8x128xf32>
    %158 = arith.divf %156, %157 : vector<8x128xf32>
    %cst_45 = arith.constant 2.000000e+00 : f32
    %159 = vector.broadcast %cst_45 : f32 to vector<8x128xf32>
    %160 = arith.mulf %159, %158 : vector<8x128xf32>
    %cst_46 = arith.constant 1.000000e+00 : f32
    %161 = vector.broadcast %cst_46 : f32 to vector<8x128xf32>
    %162 = arith.subf %160, %161 : vector<8x128xf32>
    %163 = arith.select %17, %162, %158 : vector<8x128xi1>, vector<8x128xf32>
    %164 = vector.extract_strided_slice %163 {offsets = [0, 0], sizes = [8, 32], strides = [1, 1]} : vector<8x128xf32> to vector<8x32xf32>
    %165 = vector.extract_strided_slice %163 {offsets = [0, 32], sizes = [8, 32], strides = [1, 1]} : vector<8x128xf32> to vector<8x32xf32>
    %166 = vector.extract_strided_slice %163 {offsets = [0, 64], sizes = [8, 32], strides = [1, 1]} : vector<8x128xf32> to vector<8x32xf32>
    %167 = vector.extract_strided_slice %163 {offsets = [0, 96], sizes = [8, 32], strides = [1, 1]} : vector<8x128xf32> to vector<8x32xf32>
    %168 = arith.mulf %165, %119 : vector<8x32xf32>
    %169 = arith.mulf %164, %166 : vector<8x32xf32>
    %170 = arith.addf %168, %169 : vector<8x32xf32>
    %171 = math.tanh %170 : vector<8x32xf32>
    %172 = arith.mulf %167, %171 : vector<8x32xf32>
    %cst_47 = arith.constant 2.000000e+00 : f32
    %173 = vector.broadcast %cst_47 : f32 to vector<8x128xf32>
    %174 = arith.mulf %173, %150 : vector<8x128xf32>
    %175 = arith.select %17, %174, %150 : vector<8x128xi1>, vector<8x128xf32>
    %176 = arith.negf %175 : vector<8x128xf32>
    %177 = math.exp %176 : vector<8x128xf32>
    %cst_48 = arith.constant 1.000000e+00 : f32
    %178 = vector.broadcast %cst_48 : f32 to vector<8x128xf32>
    %179 = arith.addf %178, %177 : vector<8x128xf32>
    %180 = arith.divf %178, %179 : vector<8x128xf32>
    %cst_49 = arith.constant 2.000000e+00 : f32
    %181 = vector.broadcast %cst_49 : f32 to vector<8x128xf32>
    %182 = arith.mulf %181, %180 : vector<8x128xf32>
    %cst_50 = arith.constant 1.000000e+00 : f32
    %183 = vector.broadcast %cst_50 : f32 to vector<8x128xf32>
    %184 = arith.subf %182, %183 : vector<8x128xf32>
    %185 = arith.select %17, %184, %180 : vector<8x128xi1>, vector<8x128xf32>
    %186 = vector.extract_strided_slice %185 {offsets = [0, 0], sizes = [8, 32], strides = [1, 1]} : vector<8x128xf32> to vector<8x32xf32>
    %187 = vector.extract_strided_slice %185 {offsets = [0, 32], sizes = [8, 32], strides = [1, 1]} : vector<8x128xf32> to vector<8x32xf32>
    %188 = vector.extract_strided_slice %185 {offsets = [0, 64], sizes = [8, 32], strides = [1, 1]} : vector<8x128xf32> to vector<8x32xf32>
    %189 = vector.extract_strided_slice %185 {offsets = [0, 96], sizes = [8, 32], strides = [1, 1]} : vector<8x128xf32> to vector<8x32xf32>
    %190 = arith.mulf %187, %141 : vector<8x32xf32>
    %191 = arith.mulf %186, %188 : vector<8x32xf32>
    %192 = arith.addf %190, %191 : vector<8x32xf32>
    %193 = math.tanh %192 : vector<8x32xf32>
    %194 = arith.mulf %189, %193 : vector<8x32xf32>
    %cst_51 = arith.constant dense<0.000000e+00> : vector<8x128xf32>
    %195 = tpu.matmul %194, %7, %cst_51 {dimension_numbers = #tpu.dot_dimension_numbers<[1], [0], [0], [1], [0, 0, 1, 1], [], []>} : vector<8x32xf32>, vector<32x128xf32>, vector<8x128xf32> -> vector<8x128xf32>
    %cst_52 = arith.constant dense<0.000000e+00> : vector<8x128xf32>
    %196 = tpu.matmul %172, %8, %cst_52 {dimension_numbers = #tpu.dot_dimension_numbers<[1], [0], [0], [1], [0, 0, 1, 1], [], []>} : vector<8x32xf32>, vector<32x128xf32>, vector<8x128xf32> -> vector<8x128xf32>
    %197 = arith.addf %195, %196 : vector<8x128xf32>
    %198 = arith.addf %197, %11 : vector<8x128xf32>
    %199 = vector.extract_strided_slice %5 {offsets = [32, 0], sizes = [8, 128], strides = [1, 1]} : vector<64x128xf32> to vector<8x128xf32>
    %cst_53 = arith.constant dense<0.000000e+00> : vector<8x128xf32>
    %200 = tpu.matmul %194, %6, %cst_53 {dimension_numbers = #tpu.dot_dimension_numbers<[1], [0], [0], [1], [0, 0, 1, 1], [], []>} : vector<8x32xf32>, vector<32x128xf32>, vector<8x128xf32> -> vector<8x128xf32>
    %201 = arith.addf %199, %200 : vector<8x128xf32>
    %cst_54 = arith.constant 2.000000e+00 : f32
    %202 = vector.broadcast %cst_54 : f32 to vector<8x128xf32>
    %203 = arith.mulf %202, %198 : vector<8x128xf32>
    %204 = arith.select %17, %203, %198 : vector<8x128xi1>, vector<8x128xf32>
    %205 = arith.negf %204 : vector<8x128xf32>
    %206 = math.exp %205 : vector<8x128xf32>
    %cst_55 = arith.constant 1.000000e+00 : f32
    %207 = vector.broadcast %cst_55 : f32 to vector<8x128xf32>
    %208 = arith.addf %207, %206 : vector<8x128xf32>
    %209 = arith.divf %207, %208 : vector<8x128xf32>
    %cst_56 = arith.constant 2.000000e+00 : f32
    %210 = vector.broadcast %cst_56 : f32 to vector<8x128xf32>
    %211 = arith.mulf %210, %209 : vector<8x128xf32>
    %cst_57 = arith.constant 1.000000e+00 : f32
    %212 = vector.broadcast %cst_57 : f32 to vector<8x128xf32>
    %213 = arith.subf %211, %212 : vector<8x128xf32>
    %214 = arith.select %17, %213, %209 : vector<8x128xi1>, vector<8x128xf32>
    %215 = vector.extract_strided_slice %214 {offsets = [0, 0], sizes = [8, 32], strides = [1, 1]} : vector<8x128xf32> to vector<8x32xf32>
    %216 = vector.extract_strided_slice %214 {offsets = [0, 32], sizes = [8, 32], strides = [1, 1]} : vector<8x128xf32> to vector<8x32xf32>
    %217 = vector.extract_strided_slice %214 {offsets = [0, 64], sizes = [8, 32], strides = [1, 1]} : vector<8x128xf32> to vector<8x32xf32>
    %218 = vector.extract_strided_slice %214 {offsets = [0, 96], sizes = [8, 32], strides = [1, 1]} : vector<8x128xf32> to vector<8x32xf32>
    %219 = arith.mulf %216, %170 : vector<8x32xf32>
    %220 = arith.mulf %215, %217 : vector<8x32xf32>
    %221 = arith.addf %219, %220 : vector<8x32xf32>
    %222 = math.tanh %221 : vector<8x32xf32>
    %223 = arith.mulf %218, %222 : vector<8x32xf32>
    %cst_58 = arith.constant 2.000000e+00 : f32
    %224 = vector.broadcast %cst_58 : f32 to vector<8x128xf32>
    %225 = arith.mulf %224, %201 : vector<8x128xf32>
    %226 = arith.select %17, %225, %201 : vector<8x128xi1>, vector<8x128xf32>
    %227 = arith.negf %226 : vector<8x128xf32>
    %228 = math.exp %227 : vector<8x128xf32>
    %cst_59 = arith.constant 1.000000e+00 : f32
    %229 = vector.broadcast %cst_59 : f32 to vector<8x128xf32>
    %230 = arith.addf %229, %228 : vector<8x128xf32>
    %231 = arith.divf %229, %230 : vector<8x128xf32>
    %cst_60 = arith.constant 2.000000e+00 : f32
    %232 = vector.broadcast %cst_60 : f32 to vector<8x128xf32>
    %233 = arith.mulf %232, %231 : vector<8x128xf32>
    %cst_61 = arith.constant 1.000000e+00 : f32
    %234 = vector.broadcast %cst_61 : f32 to vector<8x128xf32>
    %235 = arith.subf %233, %234 : vector<8x128xf32>
    %236 = arith.select %17, %235, %231 : vector<8x128xi1>, vector<8x128xf32>
    %237 = vector.extract_strided_slice %236 {offsets = [0, 0], sizes = [8, 32], strides = [1, 1]} : vector<8x128xf32> to vector<8x32xf32>
    %238 = vector.extract_strided_slice %236 {offsets = [0, 32], sizes = [8, 32], strides = [1, 1]} : vector<8x128xf32> to vector<8x32xf32>
    %239 = vector.extract_strided_slice %236 {offsets = [0, 64], sizes = [8, 32], strides = [1, 1]} : vector<8x128xf32> to vector<8x32xf32>
    %240 = vector.extract_strided_slice %236 {offsets = [0, 96], sizes = [8, 32], strides = [1, 1]} : vector<8x128xf32> to vector<8x32xf32>
    %241 = arith.mulf %238, %192 : vector<8x32xf32>
    %242 = arith.mulf %237, %239 : vector<8x32xf32>
    %243 = arith.addf %241, %242 : vector<8x32xf32>
    %244 = math.tanh %243 : vector<8x32xf32>
    %245 = arith.mulf %240, %244 : vector<8x32xf32>
    %cst_62 = arith.constant dense<0.000000e+00> : vector<8x128xf32>
    %246 = tpu.matmul %245, %7, %cst_62 {dimension_numbers = #tpu.dot_dimension_numbers<[1], [0], [0], [1], [0, 0, 1, 1], [], []>} : vector<8x32xf32>, vector<32x128xf32>, vector<8x128xf32> -> vector<8x128xf32>
    %cst_63 = arith.constant dense<0.000000e+00> : vector<8x128xf32>
    %247 = tpu.matmul %223, %8, %cst_63 {dimension_numbers = #tpu.dot_dimension_numbers<[1], [0], [0], [1], [0, 0, 1, 1], [], []>} : vector<8x32xf32>, vector<32x128xf32>, vector<8x128xf32> -> vector<8x128xf32>
    %248 = arith.addf %246, %247 : vector<8x128xf32>
    %249 = arith.addf %248, %11 : vector<8x128xf32>
    %250 = vector.extract_strided_slice %5 {offsets = [40, 0], sizes = [8, 128], strides = [1, 1]} : vector<64x128xf32> to vector<8x128xf32>
    %cst_64 = arith.constant dense<0.000000e+00> : vector<8x128xf32>
    %251 = tpu.matmul %245, %6, %cst_64 {dimension_numbers = #tpu.dot_dimension_numbers<[1], [0], [0], [1], [0, 0, 1, 1], [], []>} : vector<8x32xf32>, vector<32x128xf32>, vector<8x128xf32> -> vector<8x128xf32>
    %252 = arith.addf %250, %251 : vector<8x128xf32>
    %cst_65 = arith.constant 2.000000e+00 : f32
    %253 = vector.broadcast %cst_65 : f32 to vector<8x128xf32>
    %254 = arith.mulf %253, %249 : vector<8x128xf32>
    %255 = arith.select %17, %254, %249 : vector<8x128xi1>, vector<8x128xf32>
    %256 = arith.negf %255 : vector<8x128xf32>
    %257 = math.exp %256 : vector<8x128xf32>
    %cst_66 = arith.constant 1.000000e+00 : f32
    %258 = vector.broadcast %cst_66 : f32 to vector<8x128xf32>
    %259 = arith.addf %258, %257 : vector<8x128xf32>
    %260 = arith.divf %258, %259 : vector<8x128xf32>
    %cst_67 = arith.constant 2.000000e+00 : f32
    %261 = vector.broadcast %cst_67 : f32 to vector<8x128xf32>
    %262 = arith.mulf %261, %260 : vector<8x128xf32>
    %cst_68 = arith.constant 1.000000e+00 : f32
    %263 = vector.broadcast %cst_68 : f32 to vector<8x128xf32>
    %264 = arith.subf %262, %263 : vector<8x128xf32>
    %265 = arith.select %17, %264, %260 : vector<8x128xi1>, vector<8x128xf32>
    %266 = vector.extract_strided_slice %265 {offsets = [0, 0], sizes = [8, 32], strides = [1, 1]} : vector<8x128xf32> to vector<8x32xf32>
    %267 = vector.extract_strided_slice %265 {offsets = [0, 32], sizes = [8, 32], strides = [1, 1]} : vector<8x128xf32> to vector<8x32xf32>
    %268 = vector.extract_strided_slice %265 {offsets = [0, 64], sizes = [8, 32], strides = [1, 1]} : vector<8x128xf32> to vector<8x32xf32>
    %269 = vector.extract_strided_slice %265 {offsets = [0, 96], sizes = [8, 32], strides = [1, 1]} : vector<8x128xf32> to vector<8x32xf32>
    %270 = arith.mulf %267, %221 : vector<8x32xf32>
    %271 = arith.mulf %266, %268 : vector<8x32xf32>
    %272 = arith.addf %270, %271 : vector<8x32xf32>
    %273 = math.tanh %272 : vector<8x32xf32>
    %274 = arith.mulf %269, %273 : vector<8x32xf32>
    %cst_69 = arith.constant 2.000000e+00 : f32
    %275 = vector.broadcast %cst_69 : f32 to vector<8x128xf32>
    %276 = arith.mulf %275, %252 : vector<8x128xf32>
    %277 = arith.select %17, %276, %252 : vector<8x128xi1>, vector<8x128xf32>
    %278 = arith.negf %277 : vector<8x128xf32>
    %279 = math.exp %278 : vector<8x128xf32>
    %cst_70 = arith.constant 1.000000e+00 : f32
    %280 = vector.broadcast %cst_70 : f32 to vector<8x128xf32>
    %281 = arith.addf %280, %279 : vector<8x128xf32>
    %282 = arith.divf %280, %281 : vector<8x128xf32>
    %cst_71 = arith.constant 2.000000e+00 : f32
    %283 = vector.broadcast %cst_71 : f32 to vector<8x128xf32>
    %284 = arith.mulf %283, %282 : vector<8x128xf32>
    %cst_72 = arith.constant 1.000000e+00 : f32
    %285 = vector.broadcast %cst_72 : f32 to vector<8x128xf32>
    %286 = arith.subf %284, %285 : vector<8x128xf32>
    %287 = arith.select %17, %286, %282 : vector<8x128xi1>, vector<8x128xf32>
    %288 = vector.extract_strided_slice %287 {offsets = [0, 0], sizes = [8, 32], strides = [1, 1]} : vector<8x128xf32> to vector<8x32xf32>
    %289 = vector.extract_strided_slice %287 {offsets = [0, 32], sizes = [8, 32], strides = [1, 1]} : vector<8x128xf32> to vector<8x32xf32>
    %290 = vector.extract_strided_slice %287 {offsets = [0, 64], sizes = [8, 32], strides = [1, 1]} : vector<8x128xf32> to vector<8x32xf32>
    %291 = vector.extract_strided_slice %287 {offsets = [0, 96], sizes = [8, 32], strides = [1, 1]} : vector<8x128xf32> to vector<8x32xf32>
    %292 = arith.mulf %289, %243 : vector<8x32xf32>
    %293 = arith.mulf %288, %290 : vector<8x32xf32>
    %294 = arith.addf %292, %293 : vector<8x32xf32>
    %295 = math.tanh %294 : vector<8x32xf32>
    %296 = arith.mulf %291, %295 : vector<8x32xf32>
    %cst_73 = arith.constant dense<0.000000e+00> : vector<8x128xf32>
    %297 = tpu.matmul %296, %7, %cst_73 {dimension_numbers = #tpu.dot_dimension_numbers<[1], [0], [0], [1], [0, 0, 1, 1], [], []>} : vector<8x32xf32>, vector<32x128xf32>, vector<8x128xf32> -> vector<8x128xf32>
    %cst_74 = arith.constant dense<0.000000e+00> : vector<8x128xf32>
    %298 = tpu.matmul %274, %8, %cst_74 {dimension_numbers = #tpu.dot_dimension_numbers<[1], [0], [0], [1], [0, 0, 1, 1], [], []>} : vector<8x32xf32>, vector<32x128xf32>, vector<8x128xf32> -> vector<8x128xf32>
    %299 = arith.addf %297, %298 : vector<8x128xf32>
    %300 = arith.addf %299, %11 : vector<8x128xf32>
    %301 = vector.extract_strided_slice %5 {offsets = [48, 0], sizes = [8, 128], strides = [1, 1]} : vector<64x128xf32> to vector<8x128xf32>
    %cst_75 = arith.constant dense<0.000000e+00> : vector<8x128xf32>
    %302 = tpu.matmul %296, %6, %cst_75 {dimension_numbers = #tpu.dot_dimension_numbers<[1], [0], [0], [1], [0, 0, 1, 1], [], []>} : vector<8x32xf32>, vector<32x128xf32>, vector<8x128xf32> -> vector<8x128xf32>
    %303 = arith.addf %301, %302 : vector<8x128xf32>
    %cst_76 = arith.constant 2.000000e+00 : f32
    %304 = vector.broadcast %cst_76 : f32 to vector<8x128xf32>
    %305 = arith.mulf %304, %300 : vector<8x128xf32>
    %306 = arith.select %17, %305, %300 : vector<8x128xi1>, vector<8x128xf32>
    %307 = arith.negf %306 : vector<8x128xf32>
    %308 = math.exp %307 : vector<8x128xf32>
    %cst_77 = arith.constant 1.000000e+00 : f32
    %309 = vector.broadcast %cst_77 : f32 to vector<8x128xf32>
    %310 = arith.addf %309, %308 : vector<8x128xf32>
    %311 = arith.divf %309, %310 : vector<8x128xf32>
    %cst_78 = arith.constant 2.000000e+00 : f32
    %312 = vector.broadcast %cst_78 : f32 to vector<8x128xf32>
    %313 = arith.mulf %312, %311 : vector<8x128xf32>
    %cst_79 = arith.constant 1.000000e+00 : f32
    %314 = vector.broadcast %cst_79 : f32 to vector<8x128xf32>
    %315 = arith.subf %313, %314 : vector<8x128xf32>
    %316 = arith.select %17, %315, %311 : vector<8x128xi1>, vector<8x128xf32>
    %317 = vector.extract_strided_slice %316 {offsets = [0, 0], sizes = [8, 32], strides = [1, 1]} : vector<8x128xf32> to vector<8x32xf32>
    %318 = vector.extract_strided_slice %316 {offsets = [0, 32], sizes = [8, 32], strides = [1, 1]} : vector<8x128xf32> to vector<8x32xf32>
    %319 = vector.extract_strided_slice %316 {offsets = [0, 64], sizes = [8, 32], strides = [1, 1]} : vector<8x128xf32> to vector<8x32xf32>
    %320 = vector.extract_strided_slice %316 {offsets = [0, 96], sizes = [8, 32], strides = [1, 1]} : vector<8x128xf32> to vector<8x32xf32>
    %321 = arith.mulf %318, %272 : vector<8x32xf32>
    %322 = arith.mulf %317, %319 : vector<8x32xf32>
    %323 = arith.addf %321, %322 : vector<8x32xf32>
    %324 = math.tanh %323 : vector<8x32xf32>
    %325 = arith.mulf %320, %324 : vector<8x32xf32>
    %cst_80 = arith.constant 2.000000e+00 : f32
    %326 = vector.broadcast %cst_80 : f32 to vector<8x128xf32>
    %327 = arith.mulf %326, %303 : vector<8x128xf32>
    %328 = arith.select %17, %327, %303 : vector<8x128xi1>, vector<8x128xf32>
    %329 = arith.negf %328 : vector<8x128xf32>
    %330 = math.exp %329 : vector<8x128xf32>
    %cst_81 = arith.constant 1.000000e+00 : f32
    %331 = vector.broadcast %cst_81 : f32 to vector<8x128xf32>
    %332 = arith.addf %331, %330 : vector<8x128xf32>
    %333 = arith.divf %331, %332 : vector<8x128xf32>
    %cst_82 = arith.constant 2.000000e+00 : f32
    %334 = vector.broadcast %cst_82 : f32 to vector<8x128xf32>
    %335 = arith.mulf %334, %333 : vector<8x128xf32>
    %cst_83 = arith.constant 1.000000e+00 : f32
    %336 = vector.broadcast %cst_83 : f32 to vector<8x128xf32>
    %337 = arith.subf %335, %336 : vector<8x128xf32>
    %338 = arith.select %17, %337, %333 : vector<8x128xi1>, vector<8x128xf32>
    %339 = vector.extract_strided_slice %338 {offsets = [0, 0], sizes = [8, 32], strides = [1, 1]} : vector<8x128xf32> to vector<8x32xf32>
    %340 = vector.extract_strided_slice %338 {offsets = [0, 32], sizes = [8, 32], strides = [1, 1]} : vector<8x128xf32> to vector<8x32xf32>
    %341 = vector.extract_strided_slice %338 {offsets = [0, 64], sizes = [8, 32], strides = [1, 1]} : vector<8x128xf32> to vector<8x32xf32>
    %342 = vector.extract_strided_slice %338 {offsets = [0, 96], sizes = [8, 32], strides = [1, 1]} : vector<8x128xf32> to vector<8x32xf32>
    %343 = arith.mulf %340, %294 : vector<8x32xf32>
    %344 = arith.mulf %339, %341 : vector<8x32xf32>
    %345 = arith.addf %343, %344 : vector<8x32xf32>
    %346 = math.tanh %345 : vector<8x32xf32>
    %347 = arith.mulf %342, %346 : vector<8x32xf32>
    %cst_84 = arith.constant dense<0.000000e+00> : vector<8x128xf32>
    %348 = tpu.matmul %347, %7, %cst_84 {dimension_numbers = #tpu.dot_dimension_numbers<[1], [0], [0], [1], [0, 0, 1, 1], [], []>} : vector<8x32xf32>, vector<32x128xf32>, vector<8x128xf32> -> vector<8x128xf32>
    %cst_85 = arith.constant dense<0.000000e+00> : vector<8x128xf32>
    %349 = tpu.matmul %325, %8, %cst_85 {dimension_numbers = #tpu.dot_dimension_numbers<[1], [0], [0], [1], [0, 0, 1, 1], [], []>} : vector<8x32xf32>, vector<32x128xf32>, vector<8x128xf32> -> vector<8x128xf32>
    %350 = arith.addf %348, %349 : vector<8x128xf32>
    %351 = arith.addf %350, %11 : vector<8x128xf32>
    %352 = vector.extract_strided_slice %5 {offsets = [56, 0], sizes = [8, 128], strides = [1, 1]} : vector<64x128xf32> to vector<8x128xf32>
    %cst_86 = arith.constant dense<0.000000e+00> : vector<8x128xf32>
    %353 = tpu.matmul %347, %6, %cst_86 {dimension_numbers = #tpu.dot_dimension_numbers<[1], [0], [0], [1], [0, 0, 1, 1], [], []>} : vector<8x32xf32>, vector<32x128xf32>, vector<8x128xf32> -> vector<8x128xf32>
    %354 = arith.addf %352, %353 : vector<8x128xf32>
    %cst_87 = arith.constant 2.000000e+00 : f32
    %355 = vector.broadcast %cst_87 : f32 to vector<8x128xf32>
    %356 = arith.mulf %355, %351 : vector<8x128xf32>
    %357 = arith.select %17, %356, %351 : vector<8x128xi1>, vector<8x128xf32>
    %358 = arith.negf %357 : vector<8x128xf32>
    %359 = math.exp %358 : vector<8x128xf32>
    %cst_88 = arith.constant 1.000000e+00 : f32
    %360 = vector.broadcast %cst_88 : f32 to vector<8x128xf32>
    %361 = arith.addf %360, %359 : vector<8x128xf32>
    %362 = arith.divf %360, %361 : vector<8x128xf32>
    %cst_89 = arith.constant 2.000000e+00 : f32
    %363 = vector.broadcast %cst_89 : f32 to vector<8x128xf32>
    %364 = arith.mulf %363, %362 : vector<8x128xf32>
    %cst_90 = arith.constant 1.000000e+00 : f32
    %365 = vector.broadcast %cst_90 : f32 to vector<8x128xf32>
    %366 = arith.subf %364, %365 : vector<8x128xf32>
    %367 = arith.select %17, %366, %362 : vector<8x128xi1>, vector<8x128xf32>
    %368 = vector.extract_strided_slice %367 {offsets = [0, 0], sizes = [8, 32], strides = [1, 1]} : vector<8x128xf32> to vector<8x32xf32>
    %369 = vector.extract_strided_slice %367 {offsets = [0, 32], sizes = [8, 32], strides = [1, 1]} : vector<8x128xf32> to vector<8x32xf32>
    %370 = vector.extract_strided_slice %367 {offsets = [0, 64], sizes = [8, 32], strides = [1, 1]} : vector<8x128xf32> to vector<8x32xf32>
    %371 = vector.extract_strided_slice %367 {offsets = [0, 96], sizes = [8, 32], strides = [1, 1]} : vector<8x128xf32> to vector<8x32xf32>
    %372 = arith.mulf %369, %323 : vector<8x32xf32>
    %373 = arith.mulf %368, %370 : vector<8x32xf32>
    %374 = arith.addf %372, %373 : vector<8x32xf32>
    %375 = math.tanh %374 : vector<8x32xf32>
    %376 = arith.mulf %371, %375 : vector<8x32xf32>
    %cst_91 = arith.constant 2.000000e+00 : f32
    %377 = vector.broadcast %cst_91 : f32 to vector<8x128xf32>
    %378 = arith.mulf %377, %354 : vector<8x128xf32>
    %379 = arith.select %17, %378, %354 : vector<8x128xi1>, vector<8x128xf32>
    %380 = arith.negf %379 : vector<8x128xf32>
    %381 = math.exp %380 : vector<8x128xf32>
    %cst_92 = arith.constant 1.000000e+00 : f32
    %382 = vector.broadcast %cst_92 : f32 to vector<8x128xf32>
    %383 = arith.addf %382, %381 : vector<8x128xf32>
    %384 = arith.divf %382, %383 : vector<8x128xf32>
    %cst_93 = arith.constant 2.000000e+00 : f32
    %385 = vector.broadcast %cst_93 : f32 to vector<8x128xf32>
    %386 = arith.mulf %385, %384 : vector<8x128xf32>
    %cst_94 = arith.constant 1.000000e+00 : f32
    %387 = vector.broadcast %cst_94 : f32 to vector<8x128xf32>
    %388 = arith.subf %386, %387 : vector<8x128xf32>
    %389 = arith.select %17, %388, %384 : vector<8x128xi1>, vector<8x128xf32>
    %390 = vector.extract_strided_slice %389 {offsets = [0, 0], sizes = [8, 32], strides = [1, 1]} : vector<8x128xf32> to vector<8x32xf32>
    %391 = vector.extract_strided_slice %389 {offsets = [0, 32], sizes = [8, 32], strides = [1, 1]} : vector<8x128xf32> to vector<8x32xf32>
    %392 = vector.extract_strided_slice %389 {offsets = [0, 64], sizes = [8, 32], strides = [1, 1]} : vector<8x128xf32> to vector<8x32xf32>
    %393 = vector.extract_strided_slice %389 {offsets = [0, 96], sizes = [8, 32], strides = [1, 1]} : vector<8x128xf32> to vector<8x32xf32>
    %394 = arith.mulf %391, %345 : vector<8x32xf32>
    %395 = arith.mulf %390, %392 : vector<8x32xf32>
    %396 = arith.addf %394, %395 : vector<8x32xf32>
    %397 = math.tanh %396 : vector<8x32xf32>
    %398 = arith.mulf %393, %397 : vector<8x32xf32>
    %cst_95 = arith.constant dense<0.000000e+00> : vector<8x128xf32>
    %399 = tpu.matmul %398, %7, %cst_95 {dimension_numbers = #tpu.dot_dimension_numbers<[1], [0], [0], [1], [0, 0, 1, 1], [], []>} : vector<8x32xf32>, vector<32x128xf32>, vector<8x128xf32> -> vector<8x128xf32>
    %cst_96 = arith.constant dense<0.000000e+00> : vector<8x128xf32>
    %400 = tpu.matmul %376, %8, %cst_96 {dimension_numbers = #tpu.dot_dimension_numbers<[1], [0], [0], [1], [0, 0, 1, 1], [], []>} : vector<8x32xf32>, vector<32x128xf32>, vector<8x128xf32> -> vector<8x128xf32>
    %401 = arith.addf %399, %400 : vector<8x128xf32>
    %402 = arith.addf %401, %11 : vector<8x128xf32>
    %cst_97 = arith.constant 2.000000e+00 : f32
    %403 = vector.broadcast %cst_97 : f32 to vector<8x128xf32>
    %404 = arith.mulf %403, %402 : vector<8x128xf32>
    %405 = arith.select %17, %404, %402 : vector<8x128xi1>, vector<8x128xf32>
    %406 = arith.negf %405 : vector<8x128xf32>
    %407 = math.exp %406 : vector<8x128xf32>
    %cst_98 = arith.constant 1.000000e+00 : f32
    %408 = vector.broadcast %cst_98 : f32 to vector<8x128xf32>
    %409 = arith.addf %408, %407 : vector<8x128xf32>
    %410 = arith.divf %408, %409 : vector<8x128xf32>
    %cst_99 = arith.constant 2.000000e+00 : f32
    %411 = vector.broadcast %cst_99 : f32 to vector<8x128xf32>
    %412 = arith.mulf %411, %410 : vector<8x128xf32>
    %cst_100 = arith.constant 1.000000e+00 : f32
    %413 = vector.broadcast %cst_100 : f32 to vector<8x128xf32>
    %414 = arith.subf %412, %413 : vector<8x128xf32>
    %415 = arith.select %17, %414, %410 : vector<8x128xi1>, vector<8x128xf32>
    %416 = vector.extract_strided_slice %415 {offsets = [0, 0], sizes = [8, 32], strides = [1, 1]} : vector<8x128xf32> to vector<8x32xf32>
    %417 = vector.extract_strided_slice %415 {offsets = [0, 32], sizes = [8, 32], strides = [1, 1]} : vector<8x128xf32> to vector<8x32xf32>
    %418 = vector.extract_strided_slice %415 {offsets = [0, 64], sizes = [8, 32], strides = [1, 1]} : vector<8x128xf32> to vector<8x32xf32>
    %419 = vector.extract_strided_slice %415 {offsets = [0, 96], sizes = [8, 32], strides = [1, 1]} : vector<8x128xf32> to vector<8x32xf32>
    %420 = arith.mulf %417, %374 : vector<8x32xf32>
    %421 = arith.mulf %416, %418 : vector<8x32xf32>
    %422 = arith.addf %420, %421 : vector<8x32xf32>
    %423 = math.tanh %422 : vector<8x32xf32>
    %424 = arith.mulf %419, %423 : vector<8x32xf32>
    %c0_101 = arith.constant 0 : index
    %c0_102 = arith.constant 0 : index
    %425 = vector.load %arg7[%c0_101, %c0_102] : memref<32x10xf32, #tpu.memory_space<vmem>>, vector<32x10xf32>
    %cst_103 = arith.constant dense<0.000000e+00> : vector<8x10xf32>
    %426 = tpu.matmul %424, %425, %cst_103 {dimension_numbers = #tpu.dot_dimension_numbers<[1], [0], [0], [1], [0, 0, 1, 1], [], []>} : vector<8x32xf32>, vector<32x10xf32>, vector<8x10xf32> -> vector<8x10xf32>
    %c0_104 = arith.constant 0 : index
    %c0_105 = arith.constant 0 : index
    %427 = vector.load %arg8[%c0_104, %c0_105] : memref<1x10xf32, #tpu.memory_space<vmem>>, vector<1x10xf32>
    %428 = vector.broadcast %427 : vector<1x10xf32> to vector<8x10xf32>
    %429 = arith.addf %426, %428 : vector<8x10xf32>
    %c0_106 = arith.constant 0 : index
    %c0_107 = arith.constant 0 : index
    %430 = vector.load %arg9[%c0_106, %c0_107] : memref<8x10xf32, #tpu.memory_space<vmem>>, vector<8x10xf32>
    tpu.vector_store %arg9[%c0_106, %c0_107], %429 {strides = array<i32>} : memref<8x10xf32, #tpu.memory_space<vmem>>, vector<8x10xf32>,
    return
  }
}

</mosaic_0001>

<bundles_post_ra>
// kernel: a_call__.1
= control target key start
LH: loop header
LB: loop body
LE: loop exit
PB: predicated region body
PF: predicated region fallthrough
CT: control target
= control target key end

     0   :  { %14 = vsyncpa [#allocation3], 0  ;;  %s3839_s0 = inlined_call_operand.vmem [shape: f32[64,16], index: 0, kind: input, shape index: {}]   ;;  %s3840_s1 = inlined_call_operand.hbm [shape: f32[16,128], index: 1, kind: input, shape index: {}]   ;;  %s3841_s2 = inlined_call_operand.vmem [shape: f32[32,128], index: 2, kind: input, shape index: {}]   ;;  %s3842_s3 = inlined_call_operand.vmem [shape: f32[1,128], index: 3, kind: input, shape index: {}]   ;;  %s3843_s4 = inlined_call_operand.vmem [shape: f32[32,128], index: 4, kind: input, shape index: {}]   ;;  %s3844_s5 = inlined_call_operand.vmem [shape: f32[32,128], index: 5, kind: input, shape index: {}]   ;;  %s3845_s6 = inlined_call_operand.vmem [shape: f32[1,128], index: 6, kind: input, shape index: {}]   ;;  %s3846_s7 = inlined_call_operand.vmem [shape: f32[32,10], index: 7, kind: input, shape index: {}]   ;;  %s3847_s8 = inlined_call_operand.hbm [shape: f32[1,10], index: 8, kind: input, shape index: {}]   ;;  %s3848_s9 = inlined_call_operand.vmem [shape: f32[8,10], index: 9, kind: output, shape index: {}]  }
   0x1   :  { %15 = vsyncpa [#allocation5], 0  ;;  %s3254_s30 = smov [#allocation2]   ;;  %s3206_s13 = scalar_lea.hbm %s3840_s1, 256 }
   0x2   :  { %s23_s10 = sshll.u32 %s3254_s30, 4  ;;  %p3207_p0 = scmp.ne.s32.totalorder %s3840_s1, %s3206_s13  ;;  %s24_s10 = int_to_ptr.vmem [resolvable:$true] %s23_s10 }
   0x3   :  { %p3210_p1 = scmp.lt.u32.totalorder %s3206_s13, %s3840_s1 }
   0x5   :  { %p3212_p2 = pnand %p3210_p1, %p3207_p0 }
   0x7   :  { %3215 = shalt.err (!%p3212_p2)
}
   0x8   :  { %s3216_s18 = scalar_lea.vmem %s24_s10, 256  ;;  %p3221_p4 = scmp.lt.s32.totalorder %s24_s10, %s24_s10 }
   0x9   :  { %p3217_p3 = scmp.ne.s32.totalorder %s24_s10, %s3216_s18  ;;  %p3222_p5 = scmp.lt.s32.totalorder %s3216_s18, %s3216_s18 }
   0xb   :  { %p3223_p6 = por %p3222_p5, %p3221_p4 }
   0xd   :  { %p3224_p7 = pnand %p3223_p6, %p3217_p3 }
   0xf   :  { %3227 = shalt.err (!%p3224_p7)
}
  0x10   :  { %s3255_s19 = smov 128   ;;  %s3256_s20 = smov 8  }
  0x11   :  { %29 = dma.hbm_to_vmem [thread:$0]  %s3840_s1, 256, %s24_s10, [#allocation3], %s3255_s19, %s3255_s19, %s3256_s20  }
  0x12   :  { %s3257_s23 = smov [#allocation4]   ;;  %s3228_s27 = scalar_lea.hbm %s3847_s8, 16 }
  0x13   :  { %s48_s24 = sshll.u32 %s3257_s23, 4  ;;  %p3229_p8 = scmp.ne.s32.totalorder %s3847_s8, %s3228_s27  ;;  %s49_s24 = int_to_ptr.vmem [resolvable:$true] %s48_s24 }
  0x14   :  { %p3232_p9 = scmp.lt.u32.totalorder %s3228_s27, %s3847_s8 }
  0x16   :  { %p3234_p10 = pnand %p3232_p9, %p3229_p8 }
  0x18   :  { %3237 = shalt.err (!%p3234_p10)
}
  0x19   :  { %s3238_s12 = scalar_lea.vmem %s49_s24, 16  ;;  %s3242_s1 = scalar_lea.vmem %s49_s24, 32 }
  0x1a   :  { %p3239_p11 = scmp.ne.s32.totalorder %s49_s24, %s3238_s12  ;;  %p3243_p12 = scmp.lt.s32.totalorder %s49_s24, %s49_s24 }
  0x1b   :  { %p3244_p13 = scmp.lt.s32.totalorder %s3242_s1, %s3238_s12 }
  0x1d   :  { %p3245_p0 = por %p3244_p13, %p3243_p12 }
  0x1f   :  { %p3246_p1 = pnand %p3245_p0, %p3239_p11 }
  0x21   :  { %3249 = shalt.err (!%p3246_p1)
}
  0x22   :  { %51 = dma.hbm_to_vmem [thread:$0]  %s3847_s8, 16, %s49_s24, [#allocation5]  }
  0x23   :  { %3250 = dma.done.wait [#allocation3], 256  }
  0x24   :  { %3251 = vsyncadd [#allocation3], 4294967040 }
  0x25   :  { %3252 = dma.done.wait [#allocation5], 16  }
  0x26   :  { %3253 = vsyncadd [#allocation5], 4294967280  ;;  %vm75_vm0 = vcmask 130048   ;;  %v66_v0 = vld [vmem:[#allocation2] sm:$0xff]  ;;  %v67_v1 = vld [vmem:[#allocation2 + $0x8] sm:$0xff]  ;;  %v224_v5 = vlaneseq  ;;  %s3258_s19 = smov 64  }
  0x27   :  { %v58_v2 = vld [vmem:[%s3839_s0] sm:$0xff]  ;;  %v2951_v3 = vpack.c.bf16 %v67_v1, %v66_v0  ;;  %v59_v4 = vld [vmem:[%s3839_s0 + $0x8] sm:$0xff]  ;;  %s3259_s20 = smov 32   ;;  %v3260_v29 = vmov 0.0|0.0   ;;  %v60_v32 = vld [vmem:[%s3839_s0 + $0x10] sm:$0xff]  ;;  %vm3261_vm4 = vmmov 0  }
  0x28   :  { %2675 = vmatprep.mubr.msk.f32.mxu0 %vm75_vm0, %v58_v2  ;;  %v225_v6 = vand.u32 127, %v224_v5  ;;  %v3348_v7 = vld [vmem:[%s3842_s3] ss:$0 sm:$0xff]  ;;  %v214_v27 = vld [vmem:[%s3844_s5 + $0x8] sm:$0xff]  ;;  %2955 = vmatprep.subr.bf16.mxu1 %v3260_v29  ;;  %v61_v33 = vld [vmem:[%s3839_s0 + $0x18] sm:$0xff]  ;;  %v3262_v38 = vmov 0.0  }
  0x29   :  { %2952 = vmatprep.subr.bf16.mxu0 %v2951_v3  ;;  %v213_v26 = vld [vmem:[%s3844_s5] sm:$0xff]  ;;  %v206_v31 = vld [vmem:[%s3841_s2 + $0x8] sm:$0xff]  ;;  %v215_v35 = vld [vmem:[%s3844_s5 + $0x10] sm:$0xff]  ;;  %2695 = vmatprep.mubr.msk.f32.mxu1 %vm3261_vm4, %v3262_v38  ;;  %vm257_vm5 = vcmask 261120   ;;  %vm2467_vm6 = vcmask 80896  }
  0x2a   :  { %2954 = vmatpush3.bf16.msra.mxu0 %v2951_v3  ;;  %vm226_vm1 = vcmp.ge.s32.totalorder %v225_v6, 64  ;;  %vm227_vm2 = vcmp.lt.s32.totalorder %v225_v6, 96  ;;  %v205_v28 = vld [vmem:[%s3841_s2] sm:$0xff]  ;;  %v3381_v30 = vpack.c.bf16 %v214_v27, %v213_v26  ;;  %v216_v36 = vld [vmem:[%s3844_s5 + $0x18] sm:$0xff]  ;;  %v63_v40 = vld [vmem:[%s3839_s0 + $0x28] sm:$0xff] }
  0x2b   :  { %vm3353_vm3 = vmand %vm226_vm1, %vm227_vm2  ;;  %2967 = vmatprep.subr.bf16.mxu0 %v3260_v29  ;;  %v3393_v34 = vpack.c.bf16 %v206_v31, %v205_v28  ;;  %v62_v37 = vld [vmem:[%s3839_s0 + $0x20] sm:$0xff]  ;;  %v3409_v39 = vpack.c.bf16 %v216_v36, %v215_v35  ;;  %v210_v42 = vld [vmem:[%s3843_s4 + $0x8] sm:$0xff] }
  0x2c   :  { %2957 = vmatpush3.bf16.msra.mxu1 %v3381_v30  ;;  %v209_v41 = vld [vmem:[%s3843_s4] sm:$0xff]  ;;  %v207_v43 = vld [vmem:[%s3841_s2 + $0x10] sm:$0xff]  ;;  %v208_v44 = vld [vmem:[%s3841_s2 + $0x18] sm:$0xff] }
  0x2d   :  { %2676 = vmatmul.mubr.msk.f32.vlgmr.msra.gmra.mrb[0].mxu0 %vm75_vm0, %v59_v4  ;;  %2958 = vmatprep.subr.bf16.mxu1 %v3260_v29  ;;  %v3430_v45 = vpack.c.bf16 %v208_v44, %v207_v43  ;;  %v64_v46 = vld [vmem:[%s3839_s0 + $0x30] sm:$0xff]  ;;  %v3437_v47 = vpack.c.bf16 %v210_v42, %v209_v41  ;;  %v212_v49 = vld [vmem:[%s3843_s4 + $0x18] sm:$0xff]  ;;  %v3498_v1 = vld [vmem:[%s3845_s6] ss:$0 sm:$0xff] }
  0x2e   :  { %2678 = vmatprep.mubr.msk.f32.mxu0 %vm75_vm0, %v60_v32  ;;  %2969 = vmatpush3.bf16.msra.mxu0 %v3393_v34  ;;  %v211_v48 = vld [vmem:[%s3843_s4 + $0x10] sm:$0xff]  ;;  %v65_v50 = vld [vmem:[%s3839_s0 + $0x38] sm:$0xff] }
  0x2f   :  { %2970 = vmatprep.subr.bf16.mxu0 %v3260_v29  ;;  %v3455_v52 = vpack.c.bf16 %v212_v49, %v211_v48  ;;  %v2383_v11 = vld [vmem:[%s3846_s7 + $0x10] sm:$0xff] }
  0x30   :  { %2960 = vmatpush3.bf16.msra.mxu1 %v3409_v39 }
  0x31   :  { %2679 = vmatmul.mubr.msk.f32.gmra.mrb[2].mxu0 %vm75_vm0, %v61_v33  ;;  %2961 = vmatprep.subr.bf16.mxu1 %v3260_v29 }
  0x32   :  { %2681 = vmatprep.mubr.msk.f32.mxu0 %vm75_vm0, %v62_v37  ;;  %2972 = vmatpush3.bf16.msra.mxu0 %v3430_v45 }
  0x33   :  { %2979 = vmatprep.subr.bf16.mxu0 %v3260_v29  ;;  %2696 = vmatmul.mubr.f32.vlgmr.msra.gmra.mrb[0].mxu1 %v3262_v38 }
  0x34   :  { %2963 = vmatpush3.bf16.msra.mxu1 %v3437_v47  ;;  %2706 = vmatprep.mubr.msk.f32.mxu1 %vm3261_vm4, %v3262_v38 }
  0x35   :  { %2682 = vmatmul.mubr.msk.f32.gmra.mrb[4].mxu0 %vm75_vm0, %v63_v40  ;;  %2964 = vmatprep.subr.bf16.mxu1 %v3260_v29 }
  0x36   :  { %2684 = vmatprep.mubr.msk.f32.mxu0 %vm75_vm0, %v64_v46 }
  0x38   :  { %2966 = vmatpush3.bf16.msra.mxu1 %v3455_v52 }
  0x39   :  { %2685 = vmatmul.mubr.msk.f32.gmra.mrb[6].mxu0 %vm75_vm0, %v65_v50  ;;  %2973 = vmatprep.subr.bf16.mxu1 %v3260_v29 }
  0x3a   :  { %2717 = vmatprep.mubr.msk.f32.mxu0 %vm3261_vm4, %v3262_v38 }
 0x100   :  { %v3350_v8 = vpop.f32.mrb[0].mxu0 }
 0x101   :  { %v166_v9 = vpop.f32.mrb[1].mxu0  ;;  %v172_v0 = vadd.f32 %v3350_v8, %v3348_v7 }
 0x102   :  { %v167_v10 = vadd.f32 %v3348_v7, %v166_v9 }
 0x104   :  { %v229_v12 = vmul.f32 2.0, %v167_v10  ;;  %v3467_v55 = vpop.f32.mrb[2].mxu0 }
 0x105   :  { %v3469_v56 = vpop.f32.mrb[3].mxu0 }
 0x106   :  { %v230_v13 = vsel %vm3353_vm3, %v229_v12, %v167_v10  ;;  %v327_v59 = vpop.f32.mrb[0].mxu1 }
 0x107   :  { %v2485_v14 = vmul.f32 -1.442695, %v230_v13  ;;  %v2697_v60 = vpop.f32.mrb[1].mxu1 }
 0x108   :  { %v3471_v57 = vpop.f32.mrb[4].mxu0 }
 0x109   :  { %3108 = vpow2.f32 %v2485_v14  ;;  %v3473_v58 = vpop.f32.mrb[5].mxu0 }
 0x10c   :  { %v3475_v61 = vpop.f32.mrb[6].mxu0 }
 0x10d   :  { %v3477_v62 = vpop.f32.mrb[7].mxu0 }
 0x113   :  { %v3109_v15 = vpop.eup %3108 }
 0x114   :  { %v234_v16 = vadd.f32 1.0, %v3109_v15 }
 0x116   :  { %3110 = vrcp.f32 %v234_v16 }
 0x120   :  { %v3111_v17 = vpop.eup %3110 }
 0x121   :  { %v237_v18 = vmul.f32 2.0, %v3111_v17 }
 0x123   :  { %v2486_v19 = vadd.f32 -1.0, %v237_v18 }
 0x125   :  { %v3361_v20 = vsel %vm3353_vm3, %v2486_v19, %v3111_v17 }
 0x126   :  { %242 = vrot.lane.b32.xlu0 %v3361_v20, %s3258_s19  ;;  %v240_v23 = vmul.f32 0.0, %v3361_v20 }
 0x198   :  { %v243_v21 = vpop.permute.xlu0 %242 }
 0x199   :  { %v245_v22 = vmul.f32 %v243_v21, %v3361_v20 }
 0x19b   :  { %247 = vrot.lane.b32.xlu0 %v245_v22, %s3259_s20 }
 0x20d   :  { %v248_v24 = vpop.permute.xlu0 %247 }
 0x20e   :  { %v3368_v25 = vadd.f32 %v248_v24, %v240_v23 }
 0x210   :  { %3112 = vtanh.f32 %v3368_v25 }
 0x21a   :  { %v3113_v51 = vpop.eup %3112 }
 0x21b   :  { %253 = vrot.lane.b32.xlu1 %v3113_v51, %s3258_s19 }
 0x28d   :  { %v254_v53 = vpop.permute.xlu1 %253 }
 0x28e   :  { %v256_v54 = vmul.f32 %v254_v53, %v3361_v20 }
 0x290   :  { %332 = vrot.lane.b32.xlu1 %v256_v54, %s3259_s20 }
 0x302   :  { %v333_v63 = vpop.permute.xlu1 %332 }
 0x303   :  { %2707 = vmatmul.mubr.msk.f32.vlgmr.msra.gmra.mrb[2].mxu1 %vm257_vm5, %v333_v63  ;;  %2718 = vmatmul.mubr.msk.f32.vlgmr.msra.gmra.mrb[8].mxu0 %vm257_vm5, %v333_v63 }
 0x304   :  { %2981 = vmatpush3.bf16.msra.mxu0 %v3437_v47  ;;  %2975 = vmatpush3.bf16.msra.mxu1 %v3381_v30 }
 0x305   :  { %2982 = vmatprep.subr.bf16.mxu0 %v3260_v29  ;;  %2976 = vmatprep.subr.bf16.mxu1 %v3260_v29 }
 0x306   :  { %2739 = vmatprep.mubr.msk.f32.mxu0 %vm3261_vm4, %v3262_v38  ;;  %2728 = vmatprep.mubr.msk.f32.mxu1 %vm3261_vm4, %v3262_v38 }
 0x308   :  { %2984 = vmatpush3.bf16.msra.mxu0 %v3455_v52  ;;  %2978 = vmatpush3.bf16.msra.mxu1 %v3409_v39 }
 0x309   :  { %2985 = vmatprep.subr.bf16.mxu1 %v3260_v29  ;;  %2991 = vmatprep.subr.bf16.mxu0 %v3260_v29 }
 0x3d6   :  { %v402_v2 = vpop.f32.mrb[2].mxu1  ;;  %v473_v3 = vpop.f32.mrb[8].mxu0 }
 0x3d7   :  { %v403_v4 = vadd.f32 %v402_v2, %v327_v59  ;;  %v477_v5 = vadd.f32 %v473_v3, %v172_v0  ;;  %v2708_v6 = vpop.f32.mrb[3].mxu1  ;;  %v2719_v9 = vpop.f32.mrb[9].mxu0 }
 0x3d9   :  { %v406_v10 = vadd.f32 %v3498_v1, %v403_v4  ;;  %v506_v12 = vmul.f32 2.0, %v477_v5 }
 0x3db   :  { %v478_v13 = vmul.f32 2.0, %v406_v10  ;;  %v507_v14 = vsel %vm3353_vm3, %v506_v12, %v477_v5  ;;  %v177_v5 = vadd.f32 %v3348_v7, %v3469_v56 }
 0x3dc   :  { %v2491_v15 = vmul.f32 -1.442695, %v507_v14 }
 0x3dd   :  { %v479_v8 = vsel %vm3353_vm3, %v478_v13, %v406_v10 }
 0x3de   :  { %v2489_v16 = vmul.f32 -1.442695, %v479_v8  ;;  %3114 = vpow2.f32 %v2491_v15 }
 0x3e0   :  { %3116 = vpow2.f32 %v2489_v16 }
 0x3e8   :  { %v3115_v17 = vpop.eup %3114 }
 0x3e9   :  { %v511_v18 = vadd.f32 1.0, %v3115_v17 }
 0x3ea   :  { %v3117_v19 = vpop.eup %3116 }
 0x3eb   :  { %v483_v20 = vadd.f32 1.0, %v3117_v19  ;;  %3118 = vrcp.f32 %v511_v18 }
 0x3ed   :  { %3120 = vrcp.f32 %v483_v20 }
 0x3f5   :  { %v3119_v21 = vpop.eup %3118 }
 0x3f6   :  { %v514_v22 = vmul.f32 2.0, %v3119_v21 }
 0x3f7   :  { %v3121_v23 = vpop.eup %3120 }
 0x3f8   :  { %v2492_v24 = vadd.f32 -1.0, %v514_v22  ;;  %v486_v26 = vmul.f32 2.0, %v3121_v23 }
 0x3fa   :  { %v516_v27 = vsel %vm3353_vm3, %v2492_v24, %v3119_v21  ;;  %v2490_v28 = vadd.f32 -1.0, %v486_v26 }
 0x3fb   :  { %519 = vrot.lane.b32.xlu1 %v516_v27, %s3258_s19  ;;  %v517_v37 = vmul.f32 %v516_v27, %v3368_v25 }
 0x3fc   :  { %v488_v31 = vsel %vm3353_vm3, %v2490_v28, %v3121_v23 }
 0x3fd   :  { %491 = vrot.lane.b32.xlu0 %v488_v31, %s3258_s19  ;;  %v489_v42 = vmul.f32 0.0, %v488_v31 }
 0x46d   :  { %v520_v32 = vpop.permute.xlu1 %519 }
 0x46e   :  { %v522_v33 = vmul.f32 %v520_v32, %v516_v27 }
 0x46f   :  { %v492_v35 = vpop.permute.xlu0 %491 }
 0x470   :  { %v494_v36 = vmul.f32 %v492_v35, %v488_v31  ;;  %524 = vrot.lane.b32.xlu1 %v522_v33, %s3259_s20 }
 0x472   :  { %496 = vrot.lane.b32.xlu0 %v494_v36, %s3259_s20 }
 0x4e2   :  { %v525_v40 = vpop.permute.xlu1 %524 }
 0x4e3   :  { %v3514_v41 = vadd.f32 %v525_v40, %v517_v37 }
 0x4e4   :  { %v497_v43 = vpop.permute.xlu0 %496 }
 0x4e5   :  { %3122 = vtanh.f32 %v3514_v41  ;;  %v3517_v44 = vadd.f32 %v497_v43, %v489_v42 }
 0x4e7   :  { %3124 = vtanh.f32 %v3517_v44 }
 0x4ef   :  { %v3123_v46 = vpop.eup %3122 }
 0x4f0   :  { %530 = vrot.lane.b32.xlu1 %v3123_v46, %s3258_s19 }
 0x4f1   :  { %v3125_v48 = vpop.eup %3124 }
 0x4f2   :  { %502 = vrot.lane.b32.xlu0 %v3125_v48, %s3258_s19 }
 0x562   :  { %v531_v49 = vpop.permute.xlu1 %530 }
 0x563   :  { %v533_v50 = vmul.f32 %v531_v49, %v516_v27 }
 0x564   :  { %v503_v25 = vpop.permute.xlu0 %502 }
 0x565   :  { %v505_v51 = vmul.f32 %v503_v25, %v488_v31  ;;  %610 = vrot.lane.b32.xlu1 %v533_v50, %s3259_s20 }
 0x567   :  { %535 = vrot.lane.b32.xlu0 %v505_v51, %s3259_s20 }
 0x5d7   :  { %v611_v53 = vpop.permute.xlu1 %610 }
 0x5d8   :  { %2740 = vmatmul.mubr.msk.f32.vlgmr.msra.gmra.mrb[10].mxu0 %vm257_vm5, %v611_v53 }
 0x5d9   :  { %v536_v54 = vpop.permute.xlu0 %535  ;;  %2993 = vmatpush3.bf16.msra.mxu0 %v3381_v30  ;;  %2761 = vmatprep.mubr.msk.f32.mxu0 %vm3261_vm4, %v3262_v38 }
 0x5da   :  { %2729 = vmatmul.mubr.msk.f32.vlgmr.msra.gmra.mrb[4].mxu1 %vm257_vm5, %v536_v54  ;;  %2994 = vmatprep.subr.bf16.mxu0 %v3260_v29 }
 0x5db   :  { %2987 = vmatpush3.bf16.msra.mxu1 %v3393_v34  ;;  %2750 = vmatprep.mubr.msk.f32.mxu1 %vm3261_vm4, %v3262_v38 }
 0x5dc   :  { %2988 = vmatprep.subr.bf16.mxu1 %v3260_v29 }
 0x5dd   :  { %2996 = vmatpush3.bf16.msra.mxu0 %v3409_v39 }
 0x5de   :  { %3003 = vmatprep.subr.bf16.mxu0 %v3260_v29 }
 0x5df   :  { %2990 = vmatpush3.bf16.msra.mxu1 %v3430_v45 }
 0x5e0   :  { %2997 = vmatprep.subr.bf16.mxu1 %v3260_v29 }
 0x5e2   :  { %2751 = vmatmul.mubr.msk.f32.vlgmr.msra.gmra.mrb[6].mxu1 %vm257_vm5, %v611_v53 }
 0x5e3   :  { %2999 = vmatpush3.bf16.msra.mxu1 %v3437_v47  ;;  %2772 = vmatprep.mubr.msk.f32.mxu1 %vm3261_vm4, %v3262_v38 }
 0x5e4   :  { %3000 = vmatprep.subr.bf16.mxu1 %v3260_v29 }
 0x5e7   :  { %3002 = vmatpush3.bf16.msra.mxu1 %v3455_v52 }
 0x5e8   :  { %3009 = vmatprep.subr.bf16.mxu1 %v3260_v29 }
 0x6ab   :  { %v680_v59 = vpop.f32.mrb[10].mxu0 }
 0x6ac   :  { %v2741_v60 = vpop.f32.mrb[11].mxu0 }
 0x6ad   :  { %v605_v63 = vpop.f32.mrb[4].mxu1  ;;  %v182_v60 = vadd.f32 %v3467_v55, %v3348_v7 }
 0x6ae   :  { %v681_v0 = vadd.f32 %v680_v59, %v605_v63  ;;  %v2730_v2 = vpop.f32.mrb[5].mxu1 }
 0x6b0   :  { %v684_v3 = vadd.f32 %v3498_v1, %v681_v0 }
 0x6b2   :  { %v756_v4 = vmul.f32 2.0, %v684_v3 }
 0x6b4   :  { %v757_v6 = vsel %vm3353_vm3, %v756_v4, %v684_v3 }
 0x6b5   :  { %v2496_v9 = vmul.f32 -1.442695, %v757_v6  ;;  %v751_v10 = vpop.f32.mrb[6].mxu1 }
 0x6b6   :  { %v755_v12 = vadd.f32 %v751_v10, %v177_v5  ;;  %v2752_v13 = vpop.f32.mrb[7].mxu1 }
 0x6b7   :  { %3126 = vpow2.f32 %v2496_v9 }
 0x6b8   :  { %v784_v14 = vmul.f32 2.0, %v755_v12 }
 0x6ba   :  { %v785_v15 = vsel %vm3353_vm3, %v784_v14, %v755_v12 }
 0x6bb   :  { %v2498_v8 = vmul.f32 -1.442695, %v785_v15 }
 0x6bd   :  { %3128 = vpow2.f32 %v2498_v8 }
 0x6c1   :  { %v3127_v16 = vpop.eup %3126 }
 0x6c2   :  { %v761_v17 = vadd.f32 1.0, %v3127_v16 }
 0x6c4   :  { %3130 = vrcp.f32 %v761_v17 }
 0x6c7   :  { %v3129_v18 = vpop.eup %3128 }
 0x6c8   :  { %v789_v19 = vadd.f32 1.0, %v3129_v18 }
 0x6ca   :  { %3132 = vrcp.f32 %v789_v19 }
 0x6ce   :  { %v3131_v56 = vpop.eup %3130 }
 0x6cf   :  { %v764_v20 = vmul.f32 2.0, %v3131_v56 }
 0x6d1   :  { %v2497_v21 = vadd.f32 -1.0, %v764_v20 }
 0x6d3   :  { %v766_v22 = vsel %vm3353_vm3, %v2497_v21, %v3131_v56 }
 0x6d4   :  { %v3133_v23 = vpop.eup %3132  ;;  %769 = vrot.lane.b32.xlu0 %v766_v22, %s3258_s19  ;;  %v767_v35 = vmul.f32 %v766_v22, %v3517_v44 }
 0x6d5   :  { %v792_v24 = vmul.f32 2.0, %v3133_v23 }
 0x6d7   :  { %v2499_v26 = vadd.f32 -1.0, %v792_v24 }
 0x6d9   :  { %v794_v27 = vsel %vm3353_vm3, %v2499_v26, %v3133_v23 }
 0x6da   :  { %797 = vrot.lane.b32.xlu1 %v794_v27, %s3258_s19  ;;  %v795_v40 = vmul.f32 %v794_v27, %v3514_v41 }
 0x746   :  { %v770_v28 = vpop.permute.xlu0 %769 }
 0x747   :  { %v772_v31 = vmul.f32 %v770_v28, %v766_v22 }
 0x749   :  { %774 = vrot.lane.b32.xlu0 %v772_v31, %s3259_s20 }
 0x74c   :  { %v798_v32 = vpop.permute.xlu1 %797 }
 0x74d   :  { %v800_v33 = vmul.f32 %v798_v32, %v794_v27 }
 0x74f   :  { %802 = vrot.lane.b32.xlu1 %v800_v33, %s3259_s20 }
 0x7bb   :  { %v775_v36 = vpop.permute.xlu0 %774 }
 0x7bc   :  { %v3561_v37 = vadd.f32 %v775_v36, %v767_v35 }
 0x7be   :  { %3134 = vtanh.f32 %v3561_v37 }
 0x7c1   :  { %v803_v42 = vpop.permute.xlu1 %802 }
 0x7c2   :  { %v3565_v43 = vadd.f32 %v803_v42, %v795_v40 }
 0x7c4   :  { %3136 = vtanh.f32 %v3565_v43 }
 0x7c8   :  { %v3135_v46 = vpop.eup %3134 }
 0x7c9   :  { %780 = vrot.lane.b32.xlu0 %v3135_v46, %s3258_s19 }
 0x7ce   :  { %v3137_v48 = vpop.eup %3136 }
 0x7cf   :  { %808 = vrot.lane.b32.xlu1 %v3137_v48, %s3258_s19 }
 0x83b   :  { %v781_v49 = vpop.permute.xlu0 %780 }
 0x83c   :  { %v783_v44 = vmul.f32 %v781_v49, %v766_v22 }
 0x83e   :  { %813 = vrot.lane.b32.xlu0 %v783_v44, %s3259_s20 }
 0x841   :  { %v809_v50 = vpop.permute.xlu1 %808 }
 0x842   :  { %v811_v25 = vmul.f32 %v809_v50, %v794_v27 }
 0x844   :  { %888 = vrot.lane.b32.xlu1 %v811_v25, %s3259_s20 }
 0x8b0   :  { %v814_v41 = vpop.permute.xlu0 %813 }
 0x8b1   :  { %2762 = vmatmul.mubr.msk.f32.vlgmr.msra.gmra.mrb[12].mxu0 %vm257_vm5, %v814_v41 }
 0x8b2   :  { %3005 = vmatpush3.bf16.msra.mxu0 %v3393_v34  ;;  %2783 = vmatprep.mubr.msk.f32.mxu0 %vm3261_vm4, %v3262_v38 }
 0x8b3   :  { %3006 = vmatprep.subr.bf16.mxu0 %v3260_v29 }
 0x8b6   :  { %3008 = vmatpush3.bf16.msra.mxu0 %v3430_v45  ;;  %v889_v51 = vpop.permute.xlu1 %888 }
 0x8b7   :  { %2773 = vmatmul.mubr.msk.f32.vlgmr.msra.gmra.mrb[8].mxu1 %vm257_vm5, %v889_v51  ;;  %3015 = vmatprep.subr.bf16.mxu0 %v3260_v29 }
 0x8b8   :  { %3011 = vmatpush3.bf16.msra.mxu1 %v3381_v30  ;;  %2794 = vmatprep.mubr.msk.f32.mxu1 %vm3261_vm4, %v3262_v38 }
 0x8b9   :  { %2784 = vmatmul.mubr.msk.f32.vlgmr.msra.gmra.mrb[14].mxu0 %vm257_vm5, %v889_v51  ;;  %3012 = vmatprep.subr.bf16.mxu1 %v3260_v29 }
 0x8ba   :  { %3017 = vmatpush3.bf16.msra.mxu0 %v3437_v47  ;;  %2805 = vmatprep.mubr.msk.f32.mxu0 %vm3261_vm4, %v3262_v38 }
 0x8bb   :  { %3018 = vmatprep.subr.bf16.mxu0 %v3260_v29 }
 0x8bc   :  { %3014 = vmatpush3.bf16.msra.mxu1 %v3409_v39 }
 0x8bd   :  { %3021 = vmatprep.subr.bf16.mxu1 %v3260_v29 }
 0x8be   :  { %3020 = vmatpush3.bf16.msra.mxu0 %v3455_v52 }
 0x8bf   :  { %3027 = vmatprep.subr.bf16.mxu0 %v3260_v29 }
 0x984   :  { %v883_v53 = vpop.f32.mrb[12].mxu0 }
 0x985   :  { %v2763_v54 = vpop.f32.mrb[13].mxu0 }
 0x98a   :  { %v958_v59 = vpop.f32.mrb[8].mxu1 }
 0x98b   :  { %v959_v63 = vadd.f32 %v958_v59, %v883_v53  ;;  %v2774_v0 = vpop.f32.mrb[9].mxu1 }
 0x98c   :  { %v1029_v2 = vpop.f32.mrb[14].mxu0 }
 0x98d   :  { %v962_v3 = vadd.f32 %v3498_v1, %v959_v63  ;;  %v1033_v4 = vadd.f32 %v1029_v2, %v182_v60  ;;  %v2785_v5 = vpop.f32.mrb[15].mxu0  ;;  %v187_v63 = vadd.f32 %v3348_v7, %v3473_v58 }
 0x98f   :  { %v1034_v6 = vmul.f32 2.0, %v962_v3  ;;  %v1062_v9 = vmul.f32 2.0, %v1033_v4 }
 0x991   :  { %v1035_v10 = vsel %vm3353_vm3, %v1034_v6, %v962_v3  ;;  %v1063_v12 = vsel %vm3353_vm3, %v1062_v9, %v1033_v4 }
 0x992   :  { %v2503_v13 = vmul.f32 -1.442695, %v1035_v10  ;;  %v2505_v14 = vmul.f32 -1.442695, %v1063_v12 }
 0x994   :  { %3138 = vpow2.f32 %v2503_v13 }
 0x995   :  { %3140 = vpow2.f32 %v2505_v14 }
 0x99e   :  { %v3139_v55 = vpop.eup %3138 }
 0x99f   :  { %v3141_v15 = vpop.eup %3140  ;;  %v1039_v8 = vadd.f32 1.0, %v3139_v55 }
 0x9a0   :  { %v1067_v16 = vadd.f32 1.0, %v3141_v15 }
 0x9a1   :  { %3142 = vrcp.f32 %v1039_v8 }
 0x9a2   :  { %3144 = vrcp.f32 %v1067_v16 }
 0x9ab   :  { %v3143_v17 = vpop.eup %3142 }
 0x9ac   :  { %v3145_v18 = vpop.eup %3144  ;;  %v1042_v19 = vmul.f32 2.0, %v3143_v17 }
 0x9ad   :  { %v1070_v56 = vmul.f32 2.0, %v3145_v18 }
 0x9ae   :  { %v2504_v20 = vadd.f32 -1.0, %v1042_v19 }
 0x9af   :  { %v2506_v21 = vadd.f32 -1.0, %v1070_v56 }
 0x9b0   :  { %v1044_v22 = vsel %vm3353_vm3, %v2504_v20, %v3143_v17 }
 0x9b1   :  { %v1072_v23 = vsel %vm3353_vm3, %v2506_v21, %v3145_v18  ;;  %1047 = vrot.lane.b32.xlu0 %v1044_v22, %s3258_s19  ;;  %v1045_v31 = vmul.f32 %v1044_v22, %v3561_v37 }
 0x9b2   :  { %1075 = vrot.lane.b32.xlu1 %v1072_v23, %s3258_s19  ;;  %v1073_v32 = vmul.f32 %v1072_v23, %v3565_v43 }
 0xa23   :  { %v1048_v24 = vpop.permute.xlu0 %1047 }
 0xa24   :  { %v1076_v26 = vpop.permute.xlu1 %1075  ;;  %v1050_v27 = vmul.f32 %v1048_v24, %v1044_v22 }
 0xa25   :  { %v1078_v28 = vmul.f32 %v1076_v26, %v1072_v23 }
 0xa26   :  { %1052 = vrot.lane.b32.xlu0 %v1050_v27, %s3259_s20 }
 0xa27   :  { %1080 = vrot.lane.b32.xlu1 %v1078_v28, %s3259_s20 }
 0xa98   :  { %v1053_v33 = vpop.permute.xlu0 %1052 }
 0xa99   :  { %v1081_v35 = vpop.permute.xlu1 %1080  ;;  %v3610_v36 = vadd.f32 %v1053_v33, %v1045_v31 }
 0xa9a   :  { %v3612_v40 = vadd.f32 %v1081_v35, %v1073_v32 }
 0xa9b   :  { %3146 = vtanh.f32 %v3610_v36 }
 0xa9c   :  { %3148 = vtanh.f32 %v3612_v40 }
 0xaa5   :  { %v3147_v42 = vpop.eup %3146 }
 0xaa6   :  { %v3149_v46 = vpop.eup %3148  ;;  %1058 = vrot.lane.b32.xlu0 %v3147_v42, %s3258_s19 }
 0xaa7   :  { %1086 = vrot.lane.b32.xlu1 %v3149_v46, %s3258_s19 }
 0xb18   :  { %v1059_v48 = vpop.permute.xlu0 %1058 }
 0xb19   :  { %v1087_v37 = vpop.permute.xlu1 %1086  ;;  %v1061_v49 = vmul.f32 %v1059_v48, %v1044_v22 }
 0xb1a   :  { %v1089_v43 = vmul.f32 %v1087_v37, %v1072_v23 }
 0xb1b   :  { %1091 = vrot.lane.b32.xlu0 %v1061_v49, %s3259_s20 }
 0xb1c   :  { %1166 = vrot.lane.b32.xlu1 %v1089_v43, %s3259_s20 }
 0xb8d   :  { %v1092_v44 = vpop.permute.xlu0 %1091 }
 0xb8e   :  { %v1167_v50 = vpop.permute.xlu1 %1166  ;;  %2795 = vmatmul.mubr.msk.f32.vlgmr.msra.gmra.mrb[10].mxu1 %vm257_vm5, %v1092_v44 }
 0xb8f   :  { %2806 = vmatmul.mubr.msk.f32.vlgmr.msra.gmra.mrb[16].mxu0 %vm257_vm5, %v1167_v50  ;;  %3023 = vmatpush3.bf16.msra.mxu1 %v3393_v34 }
 0xb90   :  { %3024 = vmatprep.subr.bf16.mxu1 %v3260_v29  ;;  %2816 = vmatprep.mubr.msk.f32.mxu1 %vm3261_vm4, %v3262_v38 }
 0xb91   :  { %3029 = vmatpush3.bf16.msra.mxu0 %v3381_v30  ;;  %2827 = vmatprep.mubr.msk.f32.mxu0 %vm3261_vm4, %v3262_v38 }
 0xb92   :  { %3030 = vmatprep.subr.bf16.mxu0 %v3260_v29 }
 0xb93   :  { %3026 = vmatpush3.bf16.msra.mxu1 %v3430_v45 }
 0xb94   :  { %3033 = vmatprep.subr.bf16.mxu1 %v3260_v29 }
 0xb95   :  { %3032 = vmatpush3.bf16.msra.mxu0 %v3409_v39 }
 0xb96   :  { %2817 = vmatmul.mubr.msk.f32.vlgmr.msra.gmra.mrb[12].mxu1 %vm257_vm5, %v1167_v50  ;;  %3039 = vmatprep.subr.bf16.mxu0 %v3260_v29 }
 0xb97   :  { %3035 = vmatpush3.bf16.msra.mxu1 %v3437_v47  ;;  %2838 = vmatprep.mubr.msk.f32.mxu1 %vm3261_vm4, %v3262_v38 }
 0xb98   :  { %3036 = vmatprep.subr.bf16.mxu1 %v3260_v29 }
 0xb9b   :  { %3038 = vmatpush3.bf16.msra.mxu1 %v3455_v52 }
 0xb9c   :  { %3045 = vmatprep.subr.bf16.mxu1 %v3260_v29 }
 0xc61   :  { %v1161_v25 = vpop.f32.mrb[10].mxu1 }
 0xc62   :  { %v1236_v41 = vpop.f32.mrb[16].mxu0  ;;  %v2796_v51 = vpop.f32.mrb[11].mxu1 }
 0xc63   :  { %v1237_v53 = vadd.f32 %v1236_v41, %v1161_v25  ;;  %v2807_v54 = vpop.f32.mrb[17].mxu0  ;;  %v192_v41 = vadd.f32 %v3471_v57, %v3348_v7 }
 0xc65   :  { %v1240_v59 = vadd.f32 %v3498_v1, %v1237_v53 }
 0xc67   :  { %v1312_v60 = vmul.f32 2.0, %v1240_v59 }
 0xc69   :  { %v1313_v0 = vsel %vm3353_vm3, %v1312_v60, %v1240_v59  ;;  %v1307_v2 = vpop.f32.mrb[12].mxu1 }
 0xc6a   :  { %v2510_v3 = vmul.f32 -1.442695, %v1313_v0  ;;  %v1311_v4 = vadd.f32 %v1307_v2, %v187_v63  ;;  %v2818_v5 = vpop.f32.mrb[13].mxu1 }
 0xc6c   :  { %3150 = vpow2.f32 %v2510_v3  ;;  %v1340_v6 = vmul.f32 2.0, %v1311_v4 }
 0xc6e   :  { %v1341_v9 = vsel %vm3353_vm3, %v1340_v6, %v1311_v4 }
 0xc6f   :  { %v2512_v10 = vmul.f32 -1.442695, %v1341_v9 }
 0xc71   :  { %3152 = vpow2.f32 %v2512_v10 }
 0xc76   :  { %v3151_v12 = vpop.eup %3150 }
 0xc77   :  { %v1317_v13 = vadd.f32 1.0, %v3151_v12 }
 0xc79   :  { %3154 = vrcp.f32 %v1317_v13 }
 0xc7b   :  { %v3153_v14 = vpop.eup %3152 }
 0xc7c   :  { %v1345_v55 = vadd.f32 1.0, %v3153_v14 }
 0xc7e   :  { %3156 = vrcp.f32 %v1345_v55 }
 0xc83   :  { %v3155_v58 = vpop.eup %3154 }
 0xc84   :  { %v1320_v15 = vmul.f32 2.0, %v3155_v58 }
 0xc86   :  { %v2511_v8 = vadd.f32 -1.0, %v1320_v15 }
 0xc88   :  { %v3157_v16 = vpop.eup %3156  ;;  %v1322_v17 = vsel %vm3353_vm3, %v2511_v8, %v3155_v58 }
 0xc89   :  { %1325 = vrot.lane.b32.xlu0 %v1322_v17, %s3258_s19  ;;  %v1348_v18 = vmul.f32 2.0, %v3157_v16  ;;  %v1323_v24 = vmul.f32 %v1322_v17, %v3610_v36 }
 0xc8b   :  { %v2513_v19 = vadd.f32 -1.0, %v1348_v18 }
 0xc8d   :  { %v1350_v56 = vsel %vm3353_vm3, %v2513_v19, %v3157_v16 }
 0xc8e   :  { %1353 = vrot.lane.b32.xlu1 %v1350_v56, %s3258_s19  ;;  %v1351_v28 = vmul.f32 %v1350_v56, %v3612_v40 }
 0xcfb   :  { %v1326_v20 = vpop.permute.xlu0 %1325 }
 0xcfc   :  { %v1328_v21 = vmul.f32 %v1326_v20, %v1322_v17 }
 0xcfe   :  { %1330 = vrot.lane.b32.xlu0 %v1328_v21, %s3259_s20 }
 0xd00   :  { %v1354_v22 = vpop.permute.xlu1 %1353 }
 0xd01   :  { %v1356_v23 = vmul.f32 %v1354_v22, %v1350_v56 }
 0xd03   :  { %1358 = vrot.lane.b32.xlu1 %v1356_v23, %s3259_s20 }
 0xd70   :  { %v1331_v26 = vpop.permute.xlu0 %1330 }
 0xd71   :  { %v3657_v27 = vadd.f32 %v1331_v26, %v1323_v24 }
 0xd73   :  { %3158 = vtanh.f32 %v3657_v27 }
 0xd75   :  { %v1359_v31 = vpop.permute.xlu1 %1358 }
 0xd76   :  { %v3661_v32 = vadd.f32 %v1359_v31, %v1351_v28 }
 0xd78   :  { %3160 = vtanh.f32 %v3661_v32 }
 0xd7d   :  { %v3159_v33 = vpop.eup %3158 }
 0xd7e   :  { %1336 = vrot.lane.b32.xlu0 %v3159_v33, %s3258_s19 }
 0xd82   :  { %v3161_v35 = vpop.eup %3160 }
 0xd83   :  { %1364 = vrot.lane.b32.xlu1 %v3161_v35, %s3258_s19 }
 0xdf0   :  { %v1337_v42 = vpop.permute.xlu0 %1336 }
 0xdf1   :  { %v1339_v36 = vmul.f32 %v1337_v42, %v1322_v17 }
 0xdf3   :  { %1369 = vrot.lane.b32.xlu0 %v1339_v36, %s3259_s20 }
 0xdf5   :  { %v1365_v46 = vpop.permute.xlu1 %1364 }
 0xdf6   :  { %v1367_v48 = vmul.f32 %v1365_v46, %v1350_v56 }
 0xdf8   :  { %1444 = vrot.lane.b32.xlu1 %v1367_v48, %s3259_s20 }
 0xe65   :  { %v1370_v40 = vpop.permute.xlu0 %1369 }
 0xe66   :  { %2828 = vmatmul.mubr.msk.f32.vlgmr.msra.gmra.mrb[18].mxu0 %vm257_vm5, %v1370_v40 }
 0xe67   :  { %3041 = vmatpush3.bf16.msra.mxu0 %v3393_v34  ;;  %2849 = vmatprep.mubr.msk.f32.mxu0 %vm3261_vm4, %v3262_v38 }
 0xe68   :  { %3042 = vmatprep.subr.bf16.mxu0 %v3260_v29 }
 0xe6a   :  { %v1445_v37 = vpop.permute.xlu1 %1444 }
 0xe6b   :  { %3044 = vmatpush3.bf16.msra.mxu0 %v3430_v45  ;;  %2839 = vmatmul.mubr.msk.f32.vlgmr.msra.gmra.mrb[14].mxu1 %vm257_vm5, %v1445_v37 }
 0xe6c   :  { %3047 = vmatpush3.bf16.msra.mxu1 %v3381_v30  ;;  %3051 = vmatprep.subr.bf16.mxu0 %v3260_v29 }
 0xe6d   :  { %3048 = vmatprep.subr.bf16.mxu1 %v3260_v29  ;;  %2860 = vmatprep.mubr.msk.f32.mxu1 %vm3261_vm4, %v3262_v38 }
 0xe6e   :  { %2850 = vmatmul.mubr.msk.f32.vlgmr.msra.gmra.mrb[20].mxu0 %vm257_vm5, %v1445_v37 }
 0xe6f   :  { %3053 = vmatpush3.bf16.msra.mxu0 %v3437_v47  ;;  %2871 = vmatprep.mubr.msk.f32.mxu0 %vm3261_vm4, %v3262_v38 }
 0xe70   :  { %3050 = vmatpush3.bf16.msra.mxu1 %v3409_v39  ;;  %3054 = vmatprep.subr.bf16.mxu0 %v3260_v29 }
 0xe71   :  { %3057 = vmatprep.subr.bf16.mxu1 %v3260_v29 }
 0xe73   :  { %3056 = vmatpush3.bf16.msra.mxu0 %v3455_v52 }
 0xe74   :  { %3063 = vmatprep.subr.bf16.mxu0 %v3260_v29 }
 0xf39   :  { %v1439_v49 = vpop.f32.mrb[18].mxu0 }
 0xf3a   :  { %v2829_v43 = vpop.f32.mrb[19].mxu0 }
 0xf3e   :  { %v1514_v44 = vpop.f32.mrb[14].mxu1 }
 0xf3f   :  { %v1515_v50 = vadd.f32 %v1514_v44, %v1439_v49  ;;  %v2840_v25 = vpop.f32.mrb[15].mxu1  ;;  %v197_v44 = vadd.f32 %v3348_v7, %v3477_v62 }
 0xf41   :  { %v1518_v51 = vadd.f32 %v3498_v1, %v1515_v50  ;;  %v1585_v53 = vpop.f32.mrb[20].mxu0 }
 0xf42   :  { %v1589_v54 = vadd.f32 %v1585_v53, %v192_v41  ;;  %v2851_v59 = vpop.f32.mrb[21].mxu0 }
 0xf43   :  { %v1590_v60 = vmul.f32 2.0, %v1518_v51 }
 0xf44   :  { %v1618_v63 = vmul.f32 2.0, %v1589_v54 }
 0xf45   :  { %v1591_v0 = vsel %vm3353_vm3, %v1590_v60, %v1518_v51 }
 0xf46   :  { %v2517_v2 = vmul.f32 -1.442695, %v1591_v0  ;;  %v1619_v3 = vsel %vm3353_vm3, %v1618_v63, %v1589_v54 }
 0xf47   :  { %v2519_v4 = vmul.f32 -1.442695, %v1619_v3 }
 0xf48   :  { %3162 = vpow2.f32 %v2517_v2 }
 0xf49   :  { %3164 = vpow2.f32 %v2519_v4 }
 0xf52   :  { %v3163_v5 = vpop.eup %3162 }
 0xf53   :  { %v3165_v6 = vpop.eup %3164  ;;  %v1595_v57 = vadd.f32 1.0, %v3163_v5 }
 0xf54   :  { %v1623_v9 = vadd.f32 1.0, %v3165_v6 }
 0xf55   :  { %3166 = vrcp.f32 %v1595_v57 }
 0xf56   :  { %3168 = vrcp.f32 %v1623_v9 }
 0xf5f   :  { %v3167_v10 = vpop.eup %3166 }
 0xf60   :  { %v3169_v12 = vpop.eup %3168  ;;  %v1598_v13 = vmul.f32 2.0, %v3167_v10 }
 0xf61   :  { %v1626_v14 = vmul.f32 2.0, %v3169_v12 }
 0xf62   :  { %v2518_v55 = vadd.f32 -1.0, %v1598_v13 }
 0xf63   :  { %v2520_v58 = vadd.f32 -1.0, %v1626_v14 }
 0xf64   :  { %v1600_v15 = vsel %vm3353_vm3, %v2518_v55, %v3167_v10 }
 0xf65   :  { %v1628_v8 = vsel %vm3353_vm3, %v2520_v58, %v3169_v12  ;;  %1603 = vrot.lane.b32.xlu0 %v1600_v15, %s3258_s19  ;;  %v1601_v56 = vmul.f32 %v1600_v15, %v3657_v27 }
 0xf66   :  { %1631 = vrot.lane.b32.xlu1 %v1628_v8, %s3258_s19  ;;  %v1629_v20 = vmul.f32 %v1628_v8, %v3661_v32 }
 0xfd7   :  { %v1604_v16 = vpop.permute.xlu0 %1603 }
 0xfd8   :  { %v1632_v17 = vpop.permute.xlu1 %1631  ;;  %v1606_v18 = vmul.f32 %v1604_v16, %v1600_v15 }
 0xfd9   :  { %v1634_v19 = vmul.f32 %v1632_v17, %v1628_v8 }
 0xfda   :  { %1608 = vrot.lane.b32.xlu0 %v1606_v18, %s3259_s20 }
 0xfdb   :  { %1636 = vrot.lane.b32.xlu1 %v1634_v19, %s3259_s20 }
0x104c   :  { %v1609_v21 = vpop.permute.xlu0 %1608 }
0x104d   :  { %v1637_v22 = vpop.permute.xlu1 %1636  ;;  %v3706_v23 = vadd.f32 %v1609_v21, %v1601_v56 }
0x104e   :  { %v3708_v24 = vadd.f32 %v1637_v22, %v1629_v20 }
0x104f   :  { %3170 = vtanh.f32 %v3706_v23 }
0x1050   :  { %3172 = vtanh.f32 %v3708_v24 }
0x1059   :  { %v3171_v26 = vpop.eup %3170 }
0x105a   :  { %v3173_v28 = vpop.eup %3172  ;;  %1614 = vrot.lane.b32.xlu0 %v3171_v26, %s3258_s19 }
0x105b   :  { %1642 = vrot.lane.b32.xlu1 %v3173_v28, %s3258_s19 }
0x10cc   :  { %v1615_v31 = vpop.permute.xlu0 %1614 }
0x10cd   :  { %v1643_v27 = vpop.permute.xlu1 %1642  ;;  %v1617_v33 = vmul.f32 %v1615_v31, %v1600_v15 }
0x10ce   :  { %v1645_v32 = vmul.f32 %v1643_v27, %v1628_v8 }
0x10cf   :  { %1647 = vrot.lane.b32.xlu0 %v1617_v33, %s3259_s20 }
0x10d0   :  { %1722 = vrot.lane.b32.xlu1 %v1645_v32, %s3259_s20 }
0x1141   :  { %v1648_v35 = vpop.permute.xlu0 %1647 }
0x1142   :  { %v1723_v42 = vpop.permute.xlu1 %1722  ;;  %2861 = vmatmul.mubr.msk.f32.vlgmr.msra.gmra.mrb[16].mxu1 %vm257_vm5, %v1648_v35 }
0x1143   :  { %2872 = vmatmul.mubr.msk.f32.vlgmr.msra.gmra.mrb[22].mxu0 %vm257_vm5, %v1723_v42  ;;  %3059 = vmatpush3.bf16.msra.mxu1 %v3393_v34 }
0x1144   :  { %3060 = vmatprep.subr.bf16.mxu1 %v3260_v29  ;;  %2882 = vmatprep.mubr.msk.f32.mxu1 %vm3261_vm4, %v3262_v38 }
0x1145   :  { %3065 = vmatpush3.bf16.msra.mxu0 %v3381_v30  ;;  %2893 = vmatprep.mubr.msk.f32.mxu0 %vm3261_vm4, %v3262_v38 }
0x1146   :  { %3066 = vmatprep.subr.bf16.mxu0 %v3260_v29 }
0x1147   :  { %3062 = vmatpush3.bf16.msra.mxu1 %v3430_v45 }
0x1148   :  { %3069 = vmatprep.subr.bf16.mxu1 %v3260_v29 }
0x1149   :  { %3068 = vmatpush3.bf16.msra.mxu0 %v3409_v39 }
0x114a   :  { %2883 = vmatmul.mubr.msk.f32.vlgmr.msra.gmra.mrb[18].mxu1 %vm257_vm5, %v1723_v42  ;;  %3075 = vmatprep.subr.bf16.mxu0 %v3260_v29 }
0x114b   :  { %3071 = vmatpush3.bf16.msra.mxu1 %v3437_v47  ;;  %2904 = vmatprep.mubr.msk.f32.mxu1 %vm3261_vm4, %v3262_v38 }
0x114c   :  { %3072 = vmatprep.subr.bf16.mxu1 %v3260_v29 }
0x114f   :  { %3074 = vmatpush3.bf16.msra.mxu1 %v3455_v52 }
0x1150   :  { %3081 = vmatprep.subr.bf16.mxu1 %v3260_v29 }
0x1215   :  { %v1717_v36 = vpop.f32.mrb[16].mxu1 }
0x1216   :  { %v1792_v46 = vpop.f32.mrb[22].mxu0  ;;  %v2862_v48 = vpop.f32.mrb[17].mxu1 }
0x1217   :  { %v1793_v40 = vadd.f32 %v1792_v46, %v1717_v36  ;;  %v2873_v37 = vpop.f32.mrb[23].mxu0 }
0x1219   :  { %v1796_v49 = vadd.f32 %v3498_v1, %v1793_v40 }
0x121b   :  { %v1868_v43 = vmul.f32 2.0, %v1796_v49 }
0x121d   :  { %v1869_v50 = vsel %vm3353_vm3, %v1868_v43, %v1796_v49  ;;  %v1863_v25 = vpop.f32.mrb[18].mxu1 }
0x121e   :  { %v2524_v41 = vmul.f32 -1.442695, %v1869_v50  ;;  %v1867_v51 = vadd.f32 %v1863_v25, %v197_v44  ;;  %v2884_v53 = vpop.f32.mrb[19].mxu1 }
0x1220   :  { %3174 = vpow2.f32 %v2524_v41  ;;  %v1896_v54 = vmul.f32 2.0, %v1867_v51 }
0x1222   :  { %v1897_v59 = vsel %vm3353_vm3, %v1896_v54, %v1867_v51 }
0x1223   :  { %v2526_v60 = vmul.f32 -1.442695, %v1897_v59 }
0x1225   :  { %3176 = vpow2.f32 %v2526_v60 }
0x122a   :  { %v3175_v63 = vpop.eup %3174 }
0x122b   :  { %v1873_v0 = vadd.f32 1.0, %v3175_v63 }
0x122d   :  { %3178 = vrcp.f32 %v1873_v0 }
0x122f   :  { %v3177_v2 = vpop.eup %3176 }
0x1230   :  { %v1901_v3 = vadd.f32 1.0, %v3177_v2 }
0x1232   :  { %3180 = vrcp.f32 %v1901_v3 }
0x1237   :  { %v3179_v7 = vpop.eup %3178 }
0x1238   :  { %v1876_v62 = vmul.f32 2.0, %v3179_v7 }
0x123a   :  { %v2525_v4 = vadd.f32 -1.0, %v1876_v62 }
0x123c   :  { %v3181_v5 = vpop.eup %3180  ;;  %v1878_v6 = vsel %vm3353_vm3, %v2525_v4, %v3179_v7 }
0x123d   :  { %1881 = vrot.lane.b32.xlu0 %v1878_v6, %s3258_s19  ;;  %v1904_v57 = vmul.f32 2.0, %v3181_v5  ;;  %v1879_v58 = vmul.f32 %v1878_v6, %v3706_v23 }
0x123f   :  { %v2527_v9 = vadd.f32 -1.0, %v1904_v57 }
0x1241   :  { %v1906_v10 = vsel %vm3353_vm3, %v2527_v9, %v3181_v5 }
0x1242   :  { %1909 = vrot.lane.b32.xlu1 %v1906_v10, %s3258_s19  ;;  %v1907_v16 = vmul.f32 %v1906_v10, %v3708_v24 }
0x12af   :  { %v1882_v12 = vpop.permute.xlu0 %1881 }
0x12b0   :  { %v1884_v13 = vmul.f32 %v1882_v12, %v1878_v6 }
0x12b2   :  { %1886 = vrot.lane.b32.xlu0 %v1884_v13, %s3259_s20 }
0x12b4   :  { %v1910_v14 = vpop.permute.xlu1 %1909 }
0x12b5   :  { %v1912_v55 = vmul.f32 %v1910_v14, %v1906_v10 }
0x12b7   :  { %1914 = vrot.lane.b32.xlu1 %v1912_v55, %s3259_s20 }
0x1324   :  { %v1887_v15 = vpop.permute.xlu0 %1886 }
0x1325   :  { %v3753_v8 = vadd.f32 %v1887_v15, %v1879_v58 }
0x1327   :  { %3182 = vtanh.f32 %v3753_v8 }
0x1329   :  { %v1915_v17 = vpop.permute.xlu1 %1914 }
0x132a   :  { %v3757_v18 = vadd.f32 %v1915_v17, %v1907_v16 }
0x132c   :  { %3184 = vtanh.f32 %v3757_v18 }
0x1331   :  { %v3183_v19 = vpop.eup %3182 }
0x1332   :  { %1892 = vrot.lane.b32.xlu0 %v3183_v19, %s3258_s19 }
0x1336   :  { %v3185_v56 = vpop.eup %3184 }
0x1337   :  { %1920 = vrot.lane.b32.xlu1 %v3185_v56, %s3258_s19 }
0x13a4   :  { %v1893_v20 = vpop.permute.xlu0 %1892 }
0x13a5   :  { %v1895_v21 = vmul.f32 %v1893_v20, %v1878_v6 }
0x13a7   :  { %1925 = vrot.lane.b32.xlu0 %v1895_v21, %s3259_s20 }
0x13a9   :  { %v1921_v22 = vpop.permute.xlu1 %1920 }
0x13aa   :  { %v1923_v23 = vmul.f32 %v1921_v22, %v1906_v10 }
0x13ac   :  { %2000 = vrot.lane.b32.xlu1 %v1923_v23, %s3259_s20 }
0x1419   :  { %v1926_v24 = vpop.permute.xlu0 %1925 }
0x141a   :  { %2894 = vmatmul.mubr.msk.f32.vlgmr.msra.gmra.mrb[24].mxu0 %vm257_vm5, %v1926_v24 }
0x141b   :  { %3077 = vmatpush3.bf16.msra.mxu0 %v3393_v34  ;;  %2915 = vmatprep.mubr.msk.f32.mxu0 %vm3261_vm4, %v3262_v38 }
0x141c   :  { %3078 = vmatprep.subr.bf16.mxu0 %v3260_v29 }
0x141e   :  { %v2001_v26 = vpop.permute.xlu1 %2000 }
0x141f   :  { %3080 = vmatpush3.bf16.msra.mxu0 %v3430_v45  ;;  %2905 = vmatmul.mubr.msk.f32.vlgmr.msra.gmra.mrb[20].mxu1 %vm257_vm5, %v2001_v26 }
0x1420   :  { %3087 = vmatprep.subr.bf16.mxu0 %v3260_v29  ;;  %3083 = vmatpush3.bf16.msra.mxu1 %v3381_v30 }
0x1421   :  { %3084 = vmatprep.subr.bf16.mxu1 %v3260_v29  ;;  %2926 = vmatprep.mubr.msk.f32.mxu1 %vm3261_vm4, %v3262_v38 }
0x1422   :  { %2916 = vmatmul.mubr.msk.f32.vlgmr.msra.gmra.mrb[26].mxu0 %vm257_vm5, %v2001_v26 }
0x1423   :  { %3089 = vmatpush3.bf16.msra.mxu0 %v3437_v47  ;;  %2937 = vmatprep.mubr.msk.f32.mxu0 %vm3261_vm4, %v3262_v38  ;;  %v3204_v47 = vld [vmem:[%s3842_s3] ss:$0 sm:$0xff] }
0x1424   :  { %3090 = vmatprep.subr.bf16.mxu0 %v3260_v29  ;;  %3086 = vmatpush3.bf16.msra.mxu1 %v3409_v39  ;;  %v202_v27 = vadd.f32 %v3204_v47, %v3475_v61 }
0x1425   :  { %3093 = vmatprep.subr.bf16.mxu1 %v3260_v29 }
0x1427   :  { %3092 = vmatpush3.bf16.msra.mxu0 %v3455_v52 }
0x14ed   :  { %v1995_v30 = vpop.f32.mrb[24].mxu0 }
0x14ee   :  { %v2895_v34 = vpop.f32.mrb[25].mxu0 }
0x14f2   :  { %v2070_v45 = vpop.f32.mrb[20].mxu1 }
0x14f3   :  { %v2071_v28 = vadd.f32 %v2070_v45, %v1995_v30  ;;  %v2906_v31 = vpop.f32.mrb[21].mxu1 }
0x14f5   :  { %v2074_v33 = vadd.f32 %v3498_v1, %v2071_v28  ;;  %v2141_v32 = vpop.f32.mrb[26].mxu0 }
0x14f6   :  { %v2145_v35 = vadd.f32 %v2141_v32, %v202_v27  ;;  %v2917_v39 = vpop.f32.mrb[27].mxu0  ;;  %v2381_v27 = vld [vmem:[%s3846_s7] sm:$0xff] }
0x14f7   :  { %v2146_v42 = vmul.f32 2.0, %v2074_v33 }
0x14f8   :  { %v2174_v36 = vmul.f32 2.0, %v2145_v35 }
0x14f9   :  { %v2147_v52 = vsel %vm3353_vm3, %v2146_v42, %v2074_v33  ;;  %v2382_v33 = vld [vmem:[%s3846_s7 + $0x8] sm:$0xff] }
0x14fa   :  { %v2531_v46 = vmul.f32 -1.442695, %v2147_v52  ;;  %v2175_v48 = vsel %vm3353_vm3, %v2174_v36, %v2145_v35  ;;  %v3094_v32 = vpack.c.bf16 %v2382_v33, %v2381_v27  ;;  %v2384_v35 = vld [vmem:[%s3846_s7 + $0x18] sm:$0xff] }
0x14fb   :  { %v2533_v40 = vmul.f32 -1.442695, %v2175_v48  ;;  %v3097_v39 = vpack.c.bf16 %v2384_v35, %v2383_v11  ;;  %v2539_v48 = vld [vmem:[#allocation4] ss:$0 sm:$0xff] }
0x14fc   :  { %3186 = vpow2.f32 %v2531_v46 }
0x14fd   :  { %3188 = vpow2.f32 %v2533_v40 }
0x1506   :  { %v3187_v37 = vpop.eup %3186 }
0x1507   :  { %v3189_v49 = vpop.eup %3188  ;;  %v2151_v61 = vadd.f32 1.0, %v3187_v37 }
0x1508   :  { %v2179_v43 = vadd.f32 1.0, %v3189_v49 }
0x1509   :  { %3190 = vrcp.f32 %v2151_v61 }
0x150a   :  { %3192 = vrcp.f32 %v2179_v43 }
0x1513   :  { %v3191_v1 = vpop.eup %3190 }
0x1514   :  { %v3193_v44 = vpop.eup %3192  ;;  %v2154_v50 = vmul.f32 2.0, %v3191_v1 }
0x1515   :  { %v2182_v25 = vmul.f32 2.0, %v3193_v44 }
0x1516   :  { %v2532_v41 = vadd.f32 -1.0, %v2154_v50 }
0x1517   :  { %v2534_v51 = vadd.f32 -1.0, %v2182_v25 }
0x1518   :  { %v2156_v53 = vsel %vm3353_vm3, %v2532_v41, %v3191_v1 }
0x1519   :  { %v2184_v54 = vsel %vm3353_vm3, %v2534_v51, %v3193_v44  ;;  %2159 = vrot.lane.b32.xlu0 %v2156_v53, %s3258_s19  ;;  %v2157_v2 = vmul.f32 %v2156_v53, %v3753_v8 }
0x151a   :  { %2187 = vrot.lane.b32.xlu1 %v2184_v54, %s3258_s19  ;;  %v2185_v3 = vmul.f32 %v2184_v54, %v3757_v18  ;;  %v3205_v18 = vld [vmem:[%s3845_s6] ss:$0 sm:$0xff] }
0x158b   :  { %v2160_v59 = vpop.permute.xlu0 %2159 }
0x158c   :  { %v2188_v60 = vpop.permute.xlu1 %2187  ;;  %v2162_v63 = vmul.f32 %v2160_v59, %v2156_v53 }
0x158d   :  { %v2190_v0 = vmul.f32 %v2188_v60, %v2184_v54 }
0x158e   :  { %2164 = vrot.lane.b32.xlu0 %v2162_v63, %s3259_s20 }
0x158f   :  { %2192 = vrot.lane.b32.xlu1 %v2190_v0, %s3259_s20 }
0x1600   :  { %v2165_v7 = vpop.permute.xlu0 %2164 }
0x1601   :  { %v2193_v62 = vpop.permute.xlu1 %2192  ;;  %v2167_v4 = vadd.f32 %v2165_v7, %v2157_v2 }
0x1602   :  { %v2195_v5 = vadd.f32 %v2193_v62, %v2185_v3 }
0x1603   :  { %3194 = vtanh.f32 %v2167_v4 }
0x1604   :  { %3196 = vtanh.f32 %v2195_v5 }
0x160d   :  { %v3195_v6 = vpop.eup %3194 }
0x160e   :  { %v3197_v57 = vpop.eup %3196  ;;  %2170 = vrot.lane.b32.xlu0 %v3195_v6, %s3258_s19 }
0x160f   :  { %2198 = vrot.lane.b32.xlu1 %v3197_v57, %s3258_s19 }
0x1680   :  { %v2171_v9 = vpop.permute.xlu0 %2170 }
0x1681   :  { %v2199_v10 = vpop.permute.xlu1 %2198  ;;  %v2173_v12 = vmul.f32 %v2171_v9, %v2156_v53 }
0x1682   :  { %v2201_v13 = vmul.f32 %v2199_v10, %v2184_v54 }
0x1683   :  { %2203 = vrot.lane.b32.xlu0 %v2173_v12, %s3259_s20 }
0x1684   :  { %2278 = vrot.lane.b32.xlu1 %v2201_v13, %s3259_s20 }
0x16f5   :  { %v2204_v14 = vpop.permute.xlu0 %2203 }
0x16f6   :  { %v2279_v55 = vpop.permute.xlu1 %2278  ;;  %2927 = vmatmul.mubr.msk.f32.vlgmr.msra.gmra.mrb[22].mxu1 %vm257_vm5, %v2204_v14 }
0x16f7   :  { %2938 = vmatmul.mubr.msk.f32.vlgmr.msra.gmra.mrb[28].mxu0 %vm257_vm5, %v2279_v55  ;;  %2948 = vmatprep.mubr.msk.f32.mxu1 %vm3261_vm4, %v3262_v38 }
0x16f8   :  { %3095 = vmatpush3.bf16.msra.mxu1 %v3094_v32 }
0x16f9   :  { %3096 = vmatprep.subr.bf16.mxu1 %v3260_v29 }
0x16fc   :  { %3098 = vmatpush3.bf16.msra.mxu1 %v3097_v39 }
0x17c9   :  { %v2273_v58 = vpop.f32.mrb[22].mxu1 }
0x17ca   :  { %v2348_v15 = vpop.f32.mrb[28].mxu0  ;;  %v2928_v8 = vpop.f32.mrb[23].mxu1 }
0x17cb   :  { %v2349_v16 = vadd.f32 %v2348_v15, %v2273_v58  ;;  %v2939_v17 = vpop.f32.mrb[29].mxu0 }
0x17cd   :  { %v2352_v19 = vadd.f32 %v3205_v18, %v2349_v16 }
0x17cf   :  { %v2353_v56 = vmul.f32 2.0, %v2352_v19 }
0x17d1   :  { %v2354_v20 = vsel %vm3353_vm3, %v2353_v56, %v2352_v19 }
0x17d2   :  { %v2537_v21 = vmul.f32 -1.442695, %v2354_v20 }
0x17d4   :  { %3198 = vpow2.f32 %v2537_v21 }
0x17de   :  { %v3199_v22 = vpop.eup %3198 }
0x17df   :  { %v2358_v23 = vadd.f32 1.0, %v3199_v22 }
0x17e1   :  { %3200 = vrcp.f32 %v2358_v23 }
0x17eb   :  { %v3201_v38 = vpop.eup %3200 }
0x17ec   :  { %v2361_v24 = vmul.f32 2.0, %v3201_v38 }
0x17ee   :  { %v2538_v26 = vadd.f32 -1.0, %v2361_v24 }
0x17f0   :  { %v2363_v30 = vsel %vm3353_vm3, %v2538_v26, %v3201_v38 }
0x17f1   :  { %2366 = vrot.lane.b32.xlu0 %v2363_v30, %s3258_s19  ;;  %v2364_v28 = vmul.f32 %v2363_v30, %v2167_v4 }
0x1863   :  { %v2367_v34 = vpop.permute.xlu0 %2366 }
0x1864   :  { %v2369_v45 = vmul.f32 %v2367_v34, %v2363_v30 }
0x1866   :  { %2371 = vrot.lane.b32.xlu1 %v2369_v45, %s3259_s20 }
0x18d8   :  { %v2372_v31 = vpop.permute.xlu1 %2371 }
0x18d9   :  { %v2374_v47 = vadd.f32 %v2372_v31, %v2364_v28 }
0x18db   :  { %3202 = vtanh.f32 %v2374_v47 }
0x18e5   :  { %v3203_v42 = vpop.eup %3202 }
0x18e6   :  { %2377 = vrot.lane.b32.xlu0 %v3203_v42, %s3258_s19 }
0x1958   :  { %v2378_v36 = vpop.permute.xlu0 %2377 }
0x1959   :  { %v2380_v52 = vmul.f32 %v2378_v36, %v2363_v30 }
0x195b   :  { %2393 = vrot.lane.b32.xlu1 %v2380_v52, %s3259_s20 }
0x19cd   :  { %v2394_v46 = vpop.permute.xlu1 %2393 }
0x19ce   :  { %2949 = vmatmul.mubr.msk.f32.vlgmr.msra.gmra.mrb[24].mxu1 %vm257_vm5, %v2394_v46 }
0x1aa1   :  { %v2463_v40 = vpop.f32.mrb[24].mxu1 }
0x1aa2   :  { %v2464_v37 = vadd.f32 %v2539_v48, %v2463_v40  ;;  %v2950_v49 = vpop.f32.mrb[25].mxu1 }
0x1aa4   :  { %2468 = vst.msk [vmem:[%s3848_s9] sm:$0xff] %vm2467_vm6, %v2464_v37 }
0x1aa5   :  { %2473 = vsyncpa [#allocation3], 1 }
0x1aa6   :  { %2474 = vsyncpa [#allocation5], 1 }

</bundles_post_ra>
